<compile_context>
chip_gen: v7x
topology: tpu7x:2x2x1
jax: 0.10.0
libtpu: 0.0.40
codegen_flags: <defaults>
</compile_context>

<pallas_src>
import math

import jax
import jax.numpy as jnp
from jax.experimental import pallas as pl
from jax.experimental.pallas import tpu as pltpu


def _round_up(x, m):
    return ((x + m - 1) // m) * m


def _make_mlp_kernel(mm_dtype, epilogue_dtype):
    def kernel(x_ref, w1_ref, b1_ref, w2_ref, b2_ref, o_ref):
        # layer 1: x @ W1 (MXU, f32 accumulate) + b1 -> tanh
        x = x_ref[...].astype(mm_dtype)          # cast in-kernel: no padded HBM copy of x
        h = jnp.dot(x, w1_ref[...], preferred_element_type=jnp.float32)
        h = (h + b1_ref[...]).astype(epilogue_dtype)
        h = jnp.tanh(h)                          # EUP; bf16 on v6e/v7x halves EUP work
        # TODO(synk): input_drop / hidden_drop omitted (eval-mode dropout == identity)
        # layer 2: h @ W2 (MXU, f32 accumulate) + b2 -> softplus
        z = jnp.dot(h.astype(mm_dtype), w2_ref[...], preferred_element_type=jnp.float32)
        z = (z + b2_ref[...]).astype(epilogue_dtype)
        sp = jnp.maximum(z, 0.0) + jnp.log1p(jnp.exp(-jnp.abs(z)))   # stable softplus
        o_ref[...] = sp.astype(o_ref.dtype)

    return kernel


def mlp_forward(x, w1, b1, w2, b2, *, use_bf16=True, out_dtype=None):
    """softplus(tanh(x @ W1 + b1) @ W2 + b2), fused in one pallas_call.

    Rows of x / out are tiled over a 1-D "parallel" grid (double-buffered DMA,
    megacore-shardable on v7x); W1/b1/W2/b2 stay VMEM-resident (single-buffered)
    with only their hidden dimension zero-padded to a 128 multiple.  x is read
    straight from HBM (no padded copy) and cast to bf16 in-kernel; the output is
    produced at its exact (n, num_class) shape.
    """
    n, nfeat = x.shape
    assert w1.shape[0] == nfeat
    nhid = w1.shape[1]
    assert w2.shape[0] == nhid
    num_class = w2.shape[1]

    out_dtype = x.dtype if out_dtype is None else out_dtype
    mm_dtype = jnp.bfloat16 if use_bf16 else jnp.float32
    w_bpe = 2 if use_bf16 else 4
    x_bpe = jnp.dtype(x.dtype).itemsize
    o_bpe = jnp.dtype(out_dtype).itemsize

    # bf16 transcendental epilogue only on chips with a bf16 VPU/EUP (v6e/v7x);
    # v5e and older have no bf16 EUP, so bf16 math there just adds converts.
    epilogue_dtype = jnp.float32
    if use_bf16:
        try:
            kind = jax.devices()[0].device_kind.lower()
            if not any(v in kind for v in ("v2", "v3", "v4", "v5")):
                epilogue_dtype = jnp.bfloat16
        except Exception:
            pass

    h_pad = _round_up(nhid, 128)

    # --- pad ONLY the small, one-time weight/bias arrays (hidden dim).  Padded
    # hidden columns give tanh(0+0)=0 and meet zero rows of W2 -> exact result.
    w1_p = jnp.zeros((nfeat, h_pad), mm_dtype).at[:, :nhid].set(w1.astype(mm_dtype))
    b1_p = jnp.zeros((1, h_pad), jnp.float32).at[:, :nhid].set(
        b1.reshape(1, nhid).astype(jnp.float32))
    w2_p = jnp.zeros((h_pad, num_class), mm_dtype).at[:nhid, :].set(w2.astype(mm_dtype))
    b2_p = b2.reshape(1, num_class).astype(jnp.float32)

    # --- per-generation VMEM budget (fallback = 64 MiB, the v7x per-TC size).
    try:
        vmem_cap = int(getattr(pltpu.get_tpu_info(), "vmem_capacity_bytes", 64 << 20))
    except Exception:
        vmem_cap = 64 << 20
    budget = min(int(vmem_cap * 0.7), 96 << 20)

    weight_bytes = ((nfeat * h_pad + h_pad * num_class) * w_bpe
                    + (h_pad + num_class) * 4)

    def vmem_estimate(tm):
        io = 2 * tm * (nfeat * x_bpe + num_class * o_bpe)   # double-buffered x/out tiles
        inter = tm * h_pad * 6 + tm * num_class * 6         # f32 + bf16 intermediates
        return weight_bytes + io + inter + (2 << 20)        # + compiler scratch slack

    # largest 128-multiple row tile fitting the budget (cap 2048, floor 128)
    tm = 2048
    while tm > 128 and vmem_estimate(tm) > budget:
        tm -= 128
    tm = min(tm, _round_up(n, 128))
    # keep >= 2 grid steps for mid-size batches so the "parallel" axis can shard
    # across v7x's two TensorCores (near-zero cost on single-TC v5e/v6e).
    if n > 128:
        tm = min(tm, max(128, _round_up((n + 1) // 2, 128)))

    grid = (pl.cdiv(n, tm),)
    # TODO(synk): for very large nhid where weight_bytes alone exceeds the VMEM
    # budget, fall back to tiling the contraction dims ("arbitrary" grid axis +
    # f32 VMEM accumulator) instead of keeping both weights fully resident.

    vmem_limit = int(min(max(2 * vmem_estimate(tm), 16 << 20), budget))

    flops = 2 * n * (nfeat * nhid + nhid * num_class)
    transcendentals = n * (nhid + 2 * num_class)            # tanh + exp + log1p
    bytes_accessed = n * nfeat * x_bpe + weight_bytes + n * num_class * o_bpe
    cost = pl.CostEstimate(flops=int(flops),
                           transcendentals=int(transcendentals),
                           bytes_accessed=int(bytes_accessed))

    kernel = _make_mlp_kernel(mm_dtype, epilogue_dtype)

    def build(single_buffer_weights):
        def resident(shape):
            if single_buffer_weights:
                try:
                    return pl.BlockSpec(shape, lambda i: (0, 0),
                                        pipeline_mode=pl.Buffered(1))
                except TypeError:
                    pass
            return pl.BlockSpec(shape, lambda i: (0, 0))

        return pl.pallas_call(
            kernel,
            out_shape=jax.ShapeDtypeStruct((n, num_class), out_dtype),
            grid=grid,
            in_specs=[
                pl.BlockSpec((tm, nfeat), lambda i: (i, 0)),   # x: row-tiled, un-padded
                resident((nfeat, h_pad)),                      # W1: VMEM-resident
                resident((1, h_pad)),                          # b1
                resident((h_pad, num_class)),                  # W2
                resident((1, num_class)),                      # b2
            ],
            out_specs=pl.BlockSpec((tm, num_class), lambda i: (i, 0)),
            compiler_params=pltpu.CompilerParams(
                dimension_semantics=("parallel",),
                vmem_limit_bytes=vmem_limit,
            ),
            cost_estimate=cost,
        )

    try:
        return build(True)(x, w1_p, b1_p, w2_p, b2_p)
    except Exception:
        # fallback: default double-buffered resident blocks
        return build(False)(x, w1_p, b1_p, w2_p, b2_p)


def init_params(key, nfeat, nhid, num_class):
    # matches MLPLayer.reset_parameters(): weight/bias ~ Normal(mean=-stdv, std=stdv),
    # stdv = 1/sqrt(out_features)
    k1, k2, k3, k4 = jax.random.split(key, 4)
    stdv1 = 1.0 / math.sqrt(nhid)
    stdv2 = 1.0 / math.sqrt(num_class)
    w1 = -stdv1 + stdv1 * jax.random.normal(k1, (nfeat, nhid), jnp.float32)
    b1 = -stdv1 + stdv1 * jax.random.normal(k2, (nhid,), jnp.float32)
    w2 = -stdv2 + stdv2 * jax.random.normal(k3, (nhid, num_class), jnp.float32)
    b2 = -stdv2 + stdv2 * jax.random.normal(k4, (num_class,), jnp.float32)
    return w1, b1, w2, b2


if __name__ == "__main__":
    key = jax.random.PRNGKey(0)
    kx, kp = jax.random.split(key)

    batch, nfeat, nhid, num_class = 8, 32, 64, 16
    x = jax.random.normal(kx, (batch, nfeat), jnp.float32)
    w1, b1, w2, b2 = init_params(kp, nfeat, nhid, num_class)

    # plain-JAX reference (f32)
    h_ref = jnp.tanh(x @ w1 + b1)
    ref = jax.nn.softplus(h_ref @ w2 + b2)

    # f32-operand path: tight-tolerance check
    out_f32 = mlp_forward(x, w1, b1, w2, b2, use_bf16=False)
    jax.block_until_ready(out_f32)
    assert out_f32.shape == (batch, num_class)
    assert jnp.allclose(out_f32, ref, atol=1e-5, rtol=1e-5)

    # bf16-operand path (production default, MXU-friendly): relaxed tolerance
    out_bf16 = mlp_forward(x, w1, b1, w2, b2, use_bf16=True)
    jax.block_until_ready(out_bf16)
    assert out_bf16.shape == (batch, num_class)
    assert jnp.allclose(out_bf16, ref, atol=5e-2, rtol=5e-2)

    print("KERNEL_OK")
</pallas_src>

<mosaic_0001>
module attributes {stable_mosaic.version = 11 : i64} {
  func.func @kernel(%arg0: i32, %arg1: memref<128x32xf32, #tpu.memory_space<vmem>>, %arg2: memref<32x128xf32, #tpu.memory_space<vmem>>, %arg3: memref<1x128xf32, #tpu.memory_space<vmem>>, %arg4: memref<128x16xf32, #tpu.memory_space<vmem>>, %arg5: memref<1x16xf32, #tpu.memory_space<vmem>>, %arg6: memref<128x16xf32, #tpu.memory_space<vmem>>) attributes {dimension_semantics = [#tpu.dimension_semantics<parallel>], iteration_bounds = array<i64: 1>, scalar_prefetch = 0 : i64, scratch_operands = 0 : i64, tpu.core_type = #tpu.core_type<tc>, window_params = [{transform_indices = @transform_0, window_bounds = array<i64: 128, 32>}, {pipeline_mode = #tpu.pipeline_mode<synchronous>, transform_indices = @transform_1, window_bounds = array<i64: 32, 128>}, {pipeline_mode = #tpu.pipeline_mode<synchronous>, transform_indices = @transform_2, window_bounds = array<i64: 1, 128>}, {pipeline_mode = #tpu.pipeline_mode<synchronous>, transform_indices = @transform_3, window_bounds = array<i64: 128, 16>}, {pipeline_mode = #tpu.pipeline_mode<synchronous>, transform_indices = @transform_4, window_bounds = array<i64: 1, 16>}, {transform_indices = @transform_5, window_bounds = array<i64: 128, 16>}]} {
    %c0 = arith.constant 0 : index
    %c0_0 = arith.constant 0 : index
    %0 = vector.load %arg1[%c0, %c0_0] : memref<128x32xf32, #tpu.memory_space<vmem>>, vector<128x32xf32>
    %c0_1 = arith.constant 0 : index
    %c0_2 = arith.constant 0 : index
    %1 = vector.load %arg2[%c0_1, %c0_2] : memref<32x128xf32, #tpu.memory_space<vmem>>, vector<32x128xf32>
    %cst = arith.constant dense<0.000000e+00> : vector<128x128xf32>
    %2 = tpu.matmul %0, %1, %cst {dimension_numbers = #tpu.dot_dimension_numbers<[1], [0], [0], [1], [0, 0, 1, 1], [], []>} : vector<128x32xf32>, vector<32x128xf32>, vector<128x128xf32> -> vector<128x128xf32>
    %c0_3 = arith.constant 0 : index
    %c0_4 = arith.constant 0 : index
    %3 = vector.load %arg3[%c0_3, %c0_4] : memref<1x128xf32, #tpu.memory_space<vmem>>, vector<1x128xf32>
    %4 = vector.broadcast %3 : vector<1x128xf32> to vector<128x128xf32>
    %5 = arith.addf %2, %4 : vector<128x128xf32>
    %6 = math.tanh %5 : vector<128x128xf32>
    %c0_5 = arith.constant 0 : index
    %c0_6 = arith.constant 0 : index
    %7 = vector.load %arg4[%c0_5, %c0_6] : memref<128x16xf32, #tpu.memory_space<vmem>>, vector<128x16xf32>
    %cst_7 = arith.constant dense<0.000000e+00> : vector<128x16xf32>
    %8 = tpu.matmul %6, %7, %cst_7 {dimension_numbers = #tpu.dot_dimension_numbers<[1], [0], [0], [1], [0, 0, 1, 1], [], []>} : vector<128x128xf32>, vector<128x16xf32>, vector<128x16xf32> -> vector<128x16xf32>
    %c0_8 = arith.constant 0 : index
    %c0_9 = arith.constant 0 : index
    %9 = vector.load %arg5[%c0_8, %c0_9] : memref<1x16xf32, #tpu.memory_space<vmem>>, vector<1x16xf32>
    %10 = vector.broadcast %9 : vector<1x16xf32> to vector<128x16xf32>
    %11 = arith.addf %8, %10 : vector<128x16xf32>
    %cst_10 = arith.constant 0.000000e+00 : f32
    %12 = vector.broadcast %cst_10 : f32 to vector<128x16xf32>
    %13 = arith.maximumf %11, %12 : vector<128x16xf32>
    %14 = math.absf %11 : vector<128x16xf32>
    %cst_11 = arith.constant 0.000000e+00 : f32
    %15 = vector.broadcast %cst_11 : f32 to vector<128x16xf32>
    %16 = arith.subf %15, %14 : vector<128x16xf32>
    %17 = math.exp %16 : vector<128x16xf32>
    %18 = math.log1p %17 : vector<128x16xf32>
    %19 = arith.addf %13, %18 : vector<128x16xf32>
    %c0_12 = arith.constant 0 : index
    %c0_13 = arith.constant 0 : index
    %20 = vector.load %arg6[%c0_12, %c0_13] : memref<128x16xf32, #tpu.memory_space<vmem>>, vector<128x16xf32>
    tpu.vector_store %arg6[%c0_12, %c0_13], %19 {strides = array<i32>} : memref<128x16xf32, #tpu.memory_space<vmem>>, vector<128x16xf32>,
    return
  }
  func.func @transform_0(%arg0: i32) -> (i32, i32) {
    %c0_i32 = arith.constant 0 : i32
    %c0_i32_0 = arith.constant 0 : i32
    return %arg0, %c0_i32 : i32, i32
  }
  func.func @transform_1(%arg0: i32) -> (i32, i32) {
    %c0_i32 = arith.constant 0 : i32
    %c0_i32_0 = arith.constant 0 : i32
    %c0_i32_1 = arith.constant 0 : i32
    return %c0_i32, %c0_i32_0 : i32, i32
  }
  func.func @transform_2(%arg0: i32) -> (i32, i32) {
    %c0_i32 = arith.constant 0 : i32
    %c0_i32_0 = arith.constant 0 : i32
    %c0_i32_1 = arith.constant 0 : i32
    return %c0_i32, %c0_i32_0 : i32, i32
  }
  func.func @transform_3(%arg0: i32) -> (i32, i32) {
    %c0_i32 = arith.constant 0 : i32
    %c0_i32_0 = arith.constant 0 : i32
    %c0_i32_1 = arith.constant 0 : i32
    return %c0_i32, %c0_i32_0 : i32, i32
  }
  func.func @transform_4(%arg0: i32) -> (i32, i32) {
    %c0_i32 = arith.constant 0 : i32
    %c0_i32_0 = arith.constant 0 : i32
    %c0_i32_1 = arith.constant 0 : i32
    return %c0_i32, %c0_i32_0 : i32, i32
  }
  func.func @transform_5(%arg0: i32) -> (i32, i32) {
    %c0_i32 = arith.constant 0 : i32
    %c0_i32_0 = arith.constant 0 : i32
    return %arg0, %c0_i32 : i32, i32
  }
}

module attributes {stable_mosaic.version = 11 : i64} {
  func.func @kernel(%arg0: i32, %arg1: memref<128x32xf32, #tpu.memory_space<vmem>>, %arg2: memref<32x128xf32, #tpu.memory_space<vmem>>, %arg3: memref<1x128xf32, #tpu.memory_space<vmem>>, %arg4: memref<128x16xf32, #tpu.memory_space<vmem>>, %arg5: memref<1x16xf32, #tpu.memory_space<vmem>>, %arg6: memref<128x16xf32, #tpu.memory_space<vmem>>) attributes {dimension_semantics = [#tpu.dimension_semantics<parallel>], iteration_bounds = array<i64: 1>, scalar_prefetch = 0 : i64, scratch_operands = 0 : i64, tpu.core_type = #tpu.core_type<tc>, window_params = [{transform_indices = @transform_0, window_bounds = array<i64: 128, 32>}, {pipeline_mode = #tpu.pipeline_mode<synchronous>, transform_indices = @transform_1, window_bounds = array<i64: 32, 128>}, {pipeline_mode = #tpu.pipeline_mode<synchronous>, transform_indices = @transform_2, window_bounds = array<i64: 1, 128>}, {pipeline_mode = #tpu.pipeline_mode<synchronous>, transform_indices = @transform_3, window_bounds = array<i64: 128, 16>}, {pipeline_mode = #tpu.pipeline_mode<synchronous>, transform_indices = @transform_4, window_bounds = array<i64: 1, 16>}, {transform_indices = @transform_5, window_bounds = array<i64: 128, 16>}]} {
    %c0 = arith.constant 0 : index
    %c0_0 = arith.constant 0 : index
    %0 = vector.load %arg1[%c0, %c0_0] : memref<128x32xf32, #tpu.memory_space<vmem>>, vector<128x32xf32>
    %c0_1 = arith.constant 0 : index
    %c0_2 = arith.constant 0 : index
    %1 = vector.load %arg2[%c0_1, %c0_2] : memref<32x128xf32, #tpu.memory_space<vmem>>, vector<32x128xf32>
    %cst = arith.constant dense<0.000000e+00> : vector<128x128xf32>
    %2 = tpu.matmul %0, %1, %cst {dimension_numbers = #tpu.dot_dimension_numbers<[1], [0], [0], [1], [0, 0, 1, 1], [], []>} : vector<128x32xf32>, vector<32x128xf32>, vector<128x128xf32> -> vector<128x128xf32>
    %c0_3 = arith.constant 0 : index
    %c0_4 = arith.constant 0 : index
    %3 = vector.load %arg3[%c0_3, %c0_4] : memref<1x128xf32, #tpu.memory_space<vmem>>, vector<1x128xf32>
    %4 = vector.broadcast %3 : vector<1x128xf32> to vector<128x128xf32>
    %5 = arith.addf %2, %4 : vector<128x128xf32>
    %6 = math.tanh %5 : vector<128x128xf32>
    %c0_5 = arith.constant 0 : index
    %c0_6 = arith.constant 0 : index
    %7 = vector.load %arg4[%c0_5, %c0_6] : memref<128x16xf32, #tpu.memory_space<vmem>>, vector<128x16xf32>
    %cst_7 = arith.constant dense<0.000000e+00> : vector<128x16xf32>
    %8 = tpu.matmul %6, %7, %cst_7 {dimension_numbers = #tpu.dot_dimension_numbers<[1], [0], [0], [1], [0, 0, 1, 1], [], []>} : vector<128x128xf32>, vector<128x16xf32>, vector<128x16xf32> -> vector<128x16xf32>
    %c0_8 = arith.constant 0 : index
    %c0_9 = arith.constant 0 : index
    %9 = vector.load %arg5[%c0_8, %c0_9] : memref<1x16xf32, #tpu.memory_space<vmem>>, vector<1x16xf32>
    %10 = vector.broadcast %9 : vector<1x16xf32> to vector<128x16xf32>
    %11 = arith.addf %8, %10 : vector<128x16xf32>
    %cst_10 = arith.constant 0.000000e+00 : f32
    %12 = vector.broadcast %cst_10 : f32 to vector<128x16xf32>
    %13 = arith.maximumf %11, %12 : vector<128x16xf32>
    %14 = math.absf %11 : vector<128x16xf32>
    %cst_11 = arith.constant 0.000000e+00 : f32
    %15 = vector.broadcast %cst_11 : f32 to vector<128x16xf32>
    %16 = arith.subf %15, %14 : vector<128x16xf32>
    %17 = math.exp %16 : vector<128x16xf32>
    %18 = math.log1p %17 : vector<128x16xf32>
    %19 = arith.addf %13, %18 : vector<128x16xf32>
    %c0_12 = arith.constant 0 : index
    %c0_13 = arith.constant 0 : index
    %20 = vector.load %arg6[%c0_12, %c0_13] : memref<128x16xf32, #tpu.memory_space<vmem>>, vector<128x16xf32>
    tpu.vector_store %arg6[%c0_12, %c0_13], %19 {strides = array<i32>} : memref<128x16xf32, #tpu.memory_space<vmem>>, vector<128x16xf32>,
    return
  }
  func.func @transform_0(%arg0: i32) -> (i32, i32) {
    %c0_i32 = arith.constant 0 : i32
    %c0_i32_0 = arith.constant 0 : i32
    return %arg0, %c0_i32 : i32, i32
  }
  func.func @transform_1(%arg0: i32) -> (i32, i32) {
    %c0_i32 = arith.constant 0 : i32
    %c0_i32_0 = arith.constant 0 : i32
    %c0_i32_1 = arith.constant 0 : i32
    return %c0_i32, %c0_i32_0 : i32, i32
  }
  func.func @transform_2(%arg0: i32) -> (i32, i32) {
    %c0_i32 = arith.constant 0 : i32
    %c0_i32_0 = arith.constant 0 : i32
    %c0_i32_1 = arith.constant 0 : i32
    return %c0_i32, %c0_i32_0 : i32, i32
  }
  func.func @transform_3(%arg0: i32) -> (i32, i32) {
    %c0_i32 = arith.constant 0 : i32
    %c0_i32_0 = arith.constant 0 : i32
    %c0_i32_1 = arith.constant 0 : i32
    return %c0_i32, %c0_i32_0 : i32, i32
  }
  func.func @transform_4(%arg0: i32) -> (i32, i32) {
    %c0_i32 = arith.constant 0 : i32
    %c0_i32_0 = arith.constant 0 : i32
    %c0_i32_1 = arith.constant 0 : i32
    return %c0_i32, %c0_i32_0 : i32, i32
  }
  func.func @transform_5(%arg0: i32) -> (i32, i32) {
    %c0_i32 = arith.constant 0 : i32
    %c0_i32_0 = arith.constant 0 : i32
    return %arg0, %c0_i32 : i32, i32
  }
}

</mosaic_0001>

<bundles_post_ra>
// kernel: tpu_custom_call.1
= control target key start
LH: loop header
LB: loop body
LE: loop exit
PB: predicated region body
PF: predicated region fallthrough
CT: control target
= control target key end

     0   :  { %10 = vsyncpa [#allocation3], 0  ;;  %vm48_vm0 = vcmask 261120   ;;  %vm666_vm2 = vcmask 130048   ;;  %s1410_s0 = inlined_call_operand.vmem [shape: f32[8,32], index: 0, kind: input, shape index: {}]   ;;  %s1411_s1 = inlined_call_operand.vmem [shape: f32[32,128], index: 1, kind: input, shape index: {}]   ;;  %s1412_s2 = inlined_call_operand.vmem [shape: f32[1,128], index: 2, kind: input, shape index: {}]   ;;  %s1413_s3 = inlined_call_operand.vmem [shape: f32[128,16], index: 3, kind: input, shape index: {}]   ;;  %s1414_s4 = inlined_call_operand.vmem [shape: f32[1,16], index: 4, kind: input, shape index: {}]   ;;  %s1415_s5 = inlined_call_operand.hbm [shape: f32[8,16], index: 5, kind: output, shape index: {}]  }
   0x1   :  { %v37_v0 = vld [vmem:[%s1411_s1] sm:$0xff]  ;;  %v38_v1 = vld [vmem:[%s1411_s1 + $0x8] sm:$0xff]  ;;  %v39_v3 = vld [vmem:[%s1411_s1 + $0x10] sm:$0xff] }
   0x2   :  { %v857_v2 = vpack.c.bf16 %v38_v1, %v37_v0  ;;  %v40_v4 = vld [vmem:[%s1411_s1 + $0x18] sm:$0xff]  ;;  %v21_v5 = vld [vmem:[%s1410_s0] sm:$0xff]  ;;  %v259_v8 = vld [vmem:[%s1413_s3 + $0x8] sm:$0xff] }
   0x3   :  { %v861_v6 = vpack.c.bf16 %v40_v4, %v39_v3  ;;  %777 = vmatprep.mubr.msk.f32.mxu0 %vm48_vm0, %v21_v5  ;;  %v258_v7 = vld [vmem:[%s1413_s3] sm:$0xff]  ;;  %v260_v9 = vld [vmem:[%s1413_s3 + $0x10] sm:$0xff]  ;;  %v22_v10 = vld [vmem:[%s1410_s0 + $0x8] sm:$0xff] }
   0x4   :  { %858 = vmatprep.subr.bf16.mxu0 %v857_v2  ;;  %v865_v11 = vpack.c.bf16 %v259_v8, %v258_v7  ;;  %v261_v12 = vld [vmem:[%s1413_s3 + $0x18] sm:$0xff]  ;;  %v23_v13 = vld [vmem:[%s1410_s0 + $0x10] sm:$0xff]  ;;  %v262_v15 = vld [vmem:[%s1413_s3 + $0x20] sm:$0xff] }
   0x5   :  { %860 = vmatpush3.bf16.msra.mxu0 %v857_v2  ;;  %v869_v14 = vpack.c.bf16 %v261_v12, %v260_v9  ;;  %v263_v16 = vld [vmem:[%s1413_s3 + $0x28] sm:$0xff]  ;;  %v24_v17 = vld [vmem:[%s1410_s0 + $0x18] sm:$0xff]  ;;  %v25_v18 = vld [vmem:[%s1410_s0 + $0x20] sm:$0xff] }
   0x6   :  { %862 = vmatprep.subr.bf16.mxu0 %v861_v6  ;;  %897 = vmatprep.subr.bf16.mxu1 %v865_v11  ;;  %v873_v19 = vpack.c.bf16 %v263_v16, %v262_v15  ;;  %v264_v20 = vld [vmem:[%s1413_s3 + $0x30] sm:$0xff]  ;;  %v265_v21 = vld [vmem:[%s1413_s3 + $0x38] sm:$0xff]  ;;  %v26_v22 = vld [vmem:[%s1410_s0 + $0x28] sm:$0xff] }
   0x7   :  { %905 = vmatpush3.bf16.msra.mxu1 %v865_v11  ;;  %v27_v23 = vld [vmem:[%s1410_s0 + $0x30] sm:$0xff]  ;;  %v877_v24 = vpack.c.bf16 %v265_v21, %v264_v20  ;;  %v28_v25 = vld [vmem:[%s1410_s0 + $0x38] sm:$0xff]  ;;  %v29_v26 = vld [vmem:[%s1410_s0 + $0x40] sm:$0xff] }
   0x8   :  { %898 = vmatprep.subr.bf16.mxu1 %v869_v14  ;;  %v30_v27 = vld [vmem:[%s1410_s0 + $0x48] sm:$0xff]  ;;  %v31_v28 = vld [vmem:[%s1410_s0 + $0x50] sm:$0xff]  ;;  %v32_v29 = vld [vmem:[%s1410_s0 + $0x58] sm:$0xff] }
   0x9   :  { %864 = vmatpush3.bf16.msra.mxu0 %v861_v6  ;;  %v33_v30 = vld [vmem:[%s1410_s0 + $0x60] sm:$0xff]  ;;  %v34_v31 = vld [vmem:[%s1410_s0 + $0x68] sm:$0xff]  ;;  %v35_v32 = vld [vmem:[%s1410_s0 + $0x70] sm:$0xff] }
   0xa   :  { %866 = vmatprep.subr.bf16.mxu0 %v865_v11  ;;  %v36_v33 = vld [vmem:[%s1410_s0 + $0x78] sm:$0xff]  ;;  %v266_v34 = vld [vmem:[%s1413_s3 + $0x40] sm:$0xff]  ;;  %v267_v35 = vld [vmem:[%s1413_s3 + $0x48] sm:$0xff] }
   0xb   :  { %906 = vmatpush3.bf16.msra.mxu1 %v869_v14  ;;  %v881_v36 = vpack.c.bf16 %v267_v35, %v266_v34  ;;  %v268_v37 = vld [vmem:[%s1413_s3 + $0x50] sm:$0xff]  ;;  %v269_v38 = vld [vmem:[%s1413_s3 + $0x58] sm:$0xff]  ;;  %v270_v40 = vld [vmem:[%s1413_s3 + $0x60] sm:$0xff] }
   0xc   :  { %778 = vmatmul.mubr.msk.f32.vlgmr.msra.gmra.mrb[0].mxu0 %vm48_vm0, %v22_v10  ;;  %899 = vmatprep.subr.bf16.mxu1 %v873_v19  ;;  %v885_v39 = vpack.c.bf16 %v269_v38, %v268_v37  ;;  %v271_v41 = vld [vmem:[%s1413_s3 + $0x68] sm:$0xff]  ;;  %v272_v43 = vld [vmem:[%s1413_s3 + $0x70] sm:$0xff]  ;;  %v273_v44 = vld [vmem:[%s1413_s3 + $0x78] sm:$0xff] }
   0xd   :  { %780 = vmatprep.mubr.msk.f32.mxu0 %vm48_vm0, %v23_v13  ;;  %868 = vmatpush3.bf16.msra.mxu0 %v865_v11  ;;  %v889_v42 = vpack.c.bf16 %v271_v41, %v270_v40  ;;  %v893_v45 = vpack.c.bf16 %v273_v44, %v272_v43  ;;  %v1196_v46 = vld [vmem:[%s1412_s2] ss:$0 sm:$0xff] }
   0xe   :  { %870 = vmatprep.subr.bf16.mxu0 %v869_v14 }
   0xf   :  { %907 = vmatpush3.bf16.msra.mxu1 %v873_v19 }
  0x10   :  { %781 = vmatmul.mubr.msk.f32.gmra.mrb[2].mxu0 %vm48_vm0, %v24_v17  ;;  %900 = vmatprep.subr.bf16.mxu1 %v877_v24 }
  0x11   :  { %783 = vmatprep.mubr.msk.f32.mxu0 %vm48_vm0, %v25_v18  ;;  %872 = vmatpush3.bf16.msra.mxu0 %v869_v14 }
  0x12   :  { %874 = vmatprep.subr.bf16.mxu0 %v873_v19 }
  0x13   :  { %908 = vmatpush3.bf16.msra.mxu1 %v877_v24 }
  0x14   :  { %784 = vmatmul.mubr.msk.f32.gmra.mrb[4].mxu0 %vm48_vm0, %v26_v22  ;;  %901 = vmatprep.subr.bf16.mxu1 %v881_v36 }
  0x15   :  { %786 = vmatprep.mubr.msk.f32.mxu0 %vm48_vm0, %v27_v23  ;;  %876 = vmatpush3.bf16.msra.mxu0 %v873_v19 }
  0x16   :  { %878 = vmatprep.subr.bf16.mxu0 %v877_v24 }
  0x17   :  { %909 = vmatpush3.bf16.msra.mxu1 %v881_v36 }
  0x18   :  { %787 = vmatmul.mubr.msk.f32.gmra.mrb[6].mxu0 %vm48_vm0, %v28_v25  ;;  %902 = vmatprep.subr.bf16.mxu1 %v885_v39 }
  0x19   :  { %789 = vmatprep.mubr.msk.f32.mxu0 %vm48_vm0, %v29_v26  ;;  %880 = vmatpush3.bf16.msra.mxu0 %v877_v24 }
  0x1a   :  { %882 = vmatprep.subr.bf16.mxu0 %v881_v36 }
  0x1b   :  { %910 = vmatpush3.bf16.msra.mxu1 %v885_v39 }
  0x1c   :  { %790 = vmatmul.mubr.msk.f32.gmra.mrb[8].mxu0 %vm48_vm0, %v30_v27  ;;  %903 = vmatprep.subr.bf16.mxu1 %v889_v42 }
  0x1d   :  { %792 = vmatprep.mubr.msk.f32.mxu0 %vm48_vm0, %v31_v28  ;;  %884 = vmatpush3.bf16.msra.mxu0 %v881_v36 }
  0x1e   :  { %886 = vmatprep.subr.bf16.mxu0 %v885_v39 }
  0x1f   :  { %911 = vmatpush3.bf16.msra.mxu1 %v889_v42 }
  0x20   :  { %793 = vmatmul.mubr.msk.f32.gmra.mrb[10].mxu0 %vm48_vm0, %v32_v29  ;;  %904 = vmatprep.subr.bf16.mxu1 %v893_v45 }
  0x21   :  { %795 = vmatprep.mubr.msk.f32.mxu0 %vm48_vm0, %v33_v30  ;;  %888 = vmatpush3.bf16.msra.mxu0 %v885_v39 }
  0x22   :  { %890 = vmatprep.subr.bf16.mxu0 %v889_v42 }
  0x23   :  { %912 = vmatpush3.bf16.msra.mxu1 %v893_v45 }
  0x24   :  { %796 = vmatmul.mubr.msk.f32.gmra.mrb[12].mxu0 %vm48_vm0, %v34_v31  ;;  %v1217_v31 = vld [vmem:[%s1414_s4] ss:$0 sm:$0xff] }
  0x25   :  { %798 = vmatprep.mubr.msk.f32.mxu0 %vm48_vm0, %v35_v32  ;;  %892 = vmatpush3.bf16.msra.mxu0 %v889_v42 }
  0x26   :  { %894 = vmatprep.subr.bf16.mxu0 %v893_v45 }
  0x28   :  { %799 = vmatmul.mubr.msk.f32.gmra.mrb[14].mxu0 %vm48_vm0, %v36_v33 }
  0x29   :  { %896 = vmatpush3.bf16.msra.mxu0 %v893_v45 }
  0xdf   :  { %v779_v47 = vpop.f32.mrb[0].mxu0 }
  0xe0   :  { %v169_v48 = vadd.f32 %v779_v47, %v1196_v46  ;;  %v163_v49 = vpop.f32.mrb[1].mxu0 }
  0xe1   :  { %v164_v50 = vadd.f32 %v1196_v46, %v163_v49 }
  0xe3   :  { %916 = vtanh.f32 %v164_v50  ;;  %v782_v51 = vpop.f32.mrb[2].mxu0 }
  0xe4   :  { %918 = vtanh.f32 %v169_v48  ;;  %v179_v52 = vadd.f32 %v782_v51, %v1196_v46  ;;  %v173_v53 = vpop.f32.mrb[3].mxu0 }
  0xe5   :  { %v174_v54 = vadd.f32 %v1196_v46, %v173_v53 }
  0xe7   :  { %920 = vtanh.f32 %v174_v54  ;;  %v785_v55 = vpop.f32.mrb[4].mxu0 }
  0xe8   :  { %922 = vtanh.f32 %v179_v52  ;;  %v189_v56 = vadd.f32 %v785_v55, %v1196_v46  ;;  %v183_v57 = vpop.f32.mrb[5].mxu0 }
  0xe9   :  { %v184_v58 = vadd.f32 %v1196_v46, %v183_v57 }
  0xeb   :  { %924 = vtanh.f32 %v184_v58  ;;  %v788_v59 = vpop.f32.mrb[6].mxu0 }
  0xec   :  { %926 = vtanh.f32 %v189_v56  ;;  %v199_v60 = vadd.f32 %v788_v59, %v1196_v46  ;;  %v193_v61 = vpop.f32.mrb[7].mxu0 }
  0xed   :  { %v917_v62 = vpop.eup %916  ;;  %v194_v63 = vadd.f32 %v1196_v46, %v193_v61 }
  0xee   :  { %v919_v0 = vpop.eup %918  ;;  %833 = vmatprep.mubr.f32.mxu0 %v917_v62 }
  0xef   :  { %928 = vtanh.f32 %v194_v63  ;;  %v791_v1 = vpop.f32.mrb[8].mxu0  ;;  %834 = vmatmul.mubr.f32.vlgmr.msra.gmra.mrb[16].mxu0 %v919_v0 }
  0xf0   :  { %930 = vtanh.f32 %v199_v60  ;;  %v209_v2 = vadd.f32 %v791_v1, %v1196_v46  ;;  %v203_v3 = vpop.f32.mrb[9].mxu0 }
  0xf1   :  { %v921_v4 = vpop.eup %920  ;;  %v204_v5 = vadd.f32 %v1196_v46, %v203_v3 }
  0xf2   :  { %v923_v6 = vpop.eup %922  ;;  %836 = vmatprep.mubr.f32.mxu0 %v921_v4 }
  0xf3   :  { %932 = vtanh.f32 %v204_v5  ;;  %v794_v7 = vpop.f32.mrb[10].mxu0  ;;  %837 = vmatmul.mubr.f32.gmra.mrb[18].mxu0 %v923_v6 }
  0xf4   :  { %934 = vtanh.f32 %v209_v2  ;;  %v219_v8 = vadd.f32 %v794_v7, %v1196_v46  ;;  %v213_v9 = vpop.f32.mrb[11].mxu0 }
  0xf5   :  { %v925_v10 = vpop.eup %924  ;;  %v214_v11 = vadd.f32 %v1196_v46, %v213_v9 }
  0xf6   :  { %v927_v12 = vpop.eup %926  ;;  %839 = vmatprep.mubr.f32.mxu0 %v925_v10 }
  0xf7   :  { %936 = vtanh.f32 %v214_v11  ;;  %v797_v13 = vpop.f32.mrb[12].mxu0  ;;  %840 = vmatmul.mubr.f32.gmra.mrb[20].mxu0 %v927_v12 }
  0xf8   :  { %938 = vtanh.f32 %v219_v8  ;;  %v229_v14 = vadd.f32 %v797_v13, %v1196_v46  ;;  %v223_v15 = vpop.f32.mrb[13].mxu0 }
  0xf9   :  { %v929_v16 = vpop.eup %928  ;;  %v224_v17 = vadd.f32 %v1196_v46, %v223_v15 }
  0xfa   :  { %v931_v18 = vpop.eup %930  ;;  %842 = vmatprep.mubr.f32.mxu1 %v929_v16 }
  0xfb   :  { %940 = vtanh.f32 %v224_v17  ;;  %v800_v19 = vpop.f32.mrb[14].mxu0  ;;  %843 = vmatmul.mubr.f32.vlgmr.msra.gmra.mrb[0].mxu1 %v931_v18 }
  0xfc   :  { %942 = vtanh.f32 %v229_v14  ;;  %v239_v20 = vadd.f32 %v800_v19, %v1196_v46  ;;  %v233_v21 = vpop.f32.mrb[15].mxu0 }
  0xfd   :  { %v933_v22 = vpop.eup %932  ;;  %v234_v23 = vadd.f32 %v1196_v46, %v233_v21 }
  0xfe   :  { %v935_v24 = vpop.eup %934  ;;  %845 = vmatprep.mubr.f32.mxu1 %v933_v22 }
  0xff   :  { %944 = vtanh.f32 %v234_v23  ;;  %846 = vmatmul.mubr.f32.gmra.mrb[2].mxu1 %v935_v24 }
 0x100   :  { %946 = vtanh.f32 %v239_v20 }
 0x101   :  { %v937_v25 = vpop.eup %936 }
 0x102   :  { %v939_v26 = vpop.eup %938  ;;  %848 = vmatprep.mubr.f32.mxu1 %v937_v25 }
 0x103   :  { %849 = vmatmul.mubr.f32.gmra.mrb[4].mxu1 %v939_v26 }
 0x105   :  { %v941_v27 = vpop.eup %940 }
 0x106   :  { %v943_v28 = vpop.eup %942  ;;  %851 = vmatprep.mubr.f32.mxu1 %v941_v27 }
 0x107   :  { %852 = vmatmul.mubr.f32.gmra.mrb[6].mxu1 %v943_v28 }
 0x109   :  { %v945_v29 = vpop.eup %944 }
 0x10a   :  { %v947_v30 = vpop.eup %946  ;;  %854 = vmatprep.mubr.f32.mxu1 %v945_v29 }
 0x10b   :  { %855 = vmatmul.mubr.f32.gmra.mrb[8].mxu1 %v947_v30 }
 0x1c2   :  { %v835_v32 = vpop.f32.mrb[16].mxu0 }
 0x1c3   :  { %v1220_v33 = vadd.f32 %v835_v32, %v1217_v31  ;;  %v347_v34 = vpop.f32.mrb[17].mxu0 }
 0x1c4   :  { %v1223_v35 = vadd.f32 %v1217_v31, %v347_v34 }
 0x1c5   :  { %v443_v36 = vand.u32 2147483647, %v1220_v33  ;;  %v427_v11 = vmax.f32 %v1220_v33, 0.0 }
 0x1c6   :  { %v442_v37 = vand.u32 2147483647, %v1223_v35  ;;  %v838_v38 = vpop.f32.mrb[18].mxu0  ;;  %v426_v13 = vmax.f32 %v1223_v35, 0.0 }
 0x1c7   :  { %v459_v39 = vsub.f32 0.0, %v443_v36  ;;  %v1228_v40 = vadd.f32 %v838_v38, %v1217_v31  ;;  %v357_v41 = vpop.f32.mrb[19].mxu0 }
 0x1c8   :  { %v458_v42 = vsub.f32 0.0, %v442_v37  ;;  %v1231_v43 = vadd.f32 %v1217_v31, %v357_v41 }
 0x1c9   :  { %v476_v44 = vmul.f32 1.442695, %v459_v39  ;;  %v445_v45 = vand.u32 2147483647, %v1228_v40  ;;  %v429_v14 = vmax.f32 %v1228_v40, 0.0 }
 0x1ca   :  { %v474_v46 = vmul.f32 1.442695, %v458_v42  ;;  %v444_v47 = vand.u32 2147483647, %v1231_v43  ;;  %v841_v48 = vpop.f32.mrb[20].mxu0  ;;  %v428_v19 = vmax.f32 %v1231_v43, 0.0 }
 0x1cb   :  { %948 = vpow2.f32 %v476_v44  ;;  %v461_v49 = vsub.f32 0.0, %v445_v45  ;;  %v1236_v50 = vadd.f32 %v841_v48, %v1217_v31  ;;  %v367_v51 = vpop.f32.mrb[21].mxu0 }
 0x1cc   :  { %950 = vpow2.f32 %v474_v46  ;;  %v460_v52 = vsub.f32 0.0, %v444_v47  ;;  %v1239_v53 = vadd.f32 %v1217_v31, %v367_v51 }
 0x1cd   :  { %v480_v54 = vmul.f32 1.442695, %v461_v49  ;;  %v447_v55 = vand.u32 2147483647, %v1236_v50  ;;  %v431_v20 = vmax.f32 %v1236_v50, 0.0 }
 0x1ce   :  { %v478_v56 = vmul.f32 1.442695, %v460_v52  ;;  %v446_v57 = vand.u32 2147483647, %v1239_v53  ;;  %v844_v58 = vpop.f32.mrb[0].mxu1  ;;  %v430_v32 = vmax.f32 %v1239_v53, 0.0 }
 0x1cf   :  { %952 = vpow2.f32 %v480_v54  ;;  %v463_v59 = vsub.f32 0.0, %v447_v55  ;;  %v1244_v60 = vadd.f32 %v844_v58, %v1217_v31  ;;  %v377_v61 = vpop.f32.mrb[1].mxu1 }
 0x1d0   :  { %954 = vpow2.f32 %v478_v56  ;;  %v462_v62 = vsub.f32 0.0, %v446_v57  ;;  %v1247_v63 = vadd.f32 %v1217_v31, %v377_v61 }
 0x1d1   :  { %v484_v0 = vmul.f32 1.442695, %v463_v59  ;;  %v449_v1 = vand.u32 2147483647, %v1244_v60  ;;  %v433_v44 = vmax.f32 %v1244_v60, 0.0 }
 0x1d2   :  { %v482_v2 = vmul.f32 1.442695, %v462_v62  ;;  %v847_v3 = vpop.f32.mrb[2].mxu1  ;;  %v448_v6 = vand.u32 2147483647, %v1247_v63 }
 0x1d3   :  { %956 = vpow2.f32 %v484_v0  ;;  %v465_v4 = vsub.f32 0.0, %v449_v1  ;;  %v387_v5 = vpop.f32.mrb[3].mxu1  ;;  %v1252_v9 = vadd.f32 %v847_v3, %v1217_v31 }
 0x1d4   :  { %958 = vpow2.f32 %v482_v2  ;;  %v464_v21 = vsub.f32 0.0, %v448_v6  ;;  %v1263_v26 = vadd.f32 %v1217_v31, %v387_v5 }
 0x1d5   :  { %v949_v7 = vpop.eup %948  ;;  %v488_v8 = vmul.f32 1.442695, %v465_v4  ;;  %v451_v25 = vand.u32 2147483647, %v1252_v9 }
 0x1d6   :  { %v951_v10 = vpop.eup %950  ;;  %v515_v12 = vadd.f32 1.0, %v949_v7  ;;  %v518_v15 = vmul.f32 -0.5, %v949_v7  ;;  %v850_v18 = vpop.f32.mrb[4].mxu1  ;;  %v521_v24 = vand.u32 2147483647, %v949_v7 }
 0x1d7   :  { %v506_v16 = vadd.f32 1.0, %v951_v10  ;;  %v509_v17 = vmul.f32 -0.5, %v951_v10  ;;  %960 = vpow2.f32 %v488_v8  ;;  %v1259_v22 = vpop.f32.mrb[5].mxu1  ;;  %v512_v28 = vand.u32 2147483647, %v951_v10 }
 0x1d8   :  { %962 = vlog2.f32 %v515_v12  ;;  %v519_v36 = vadd.f32 1.0, %v518_v15  ;;  %v486_v45 = vmul.f32 1.442695, %v464_v21  ;;  %vm1271_vm1 = vcmp.lt.f32.partialorder %v521_v24, 0.0004427343 }
 0x1d9   :  { %v953_v23 = vpop.eup %952  ;;  %964 = vlog2.f32 %v506_v16  ;;  %v510_v37 = vadd.f32 1.0, %v509_v17  ;;  %v467_v48 = vsub.f32 0.0, %v451_v25  ;;  %v450_v49 = vand.u32 2147483647, %v1263_v26 }
 0x1da   :  { %v955_v27 = vpop.eup %954  ;;  %v533_v29 = vadd.f32 1.0, %v953_v23  ;;  %v536_v30 = vmul.f32 -0.5, %v953_v23  ;;  %v1266_v34 = vpop.f32.mrb[6].mxu1  ;;  %v539_v42 = vand.u32 2147483647, %v953_v23  ;;  %v520_v58 = vmul.f32 %v949_v7, %v519_v36 }
 0x1db   :  { %v524_v38 = vadd.f32 1.0, %v955_v27  ;;  %v527_v39 = vmul.f32 -0.5, %v955_v27  ;;  %v1268_v41 = vpop.f32.mrb[7].mxu1  ;;  %v530_v55 = vand.u32 2147483647, %v955_v27  ;;  %v511_v59 = vmul.f32 %v951_v10, %v510_v37 }
 0x1dc   :  { %966 = vlog2.f32 %v533_v29  ;;  %v537_v52 = vadd.f32 1.0, %v536_v30  ;;  %vm1280_vm3 = vcmp.lt.f32.partialorder %v512_v28, 0.0004427343  ;;  %vm1287_vm4 = vcmp.lt.f32.partialorder %v539_v42, 0.0004427343 }
 0x1dd   :  { %v957_v46 = vpop.eup %956  ;;  %968 = vlog2.f32 %v524_v38  ;;  %v528_v54 = vadd.f32 1.0, %v527_v39  ;;  %v466_v3 = vsub.f32 0.0, %v450_v49  ;;  %v492_v6 = vmul.f32 1.442695, %v467_v48 }
 0x1de   :  { %v1276_v51 = vpop.eup %958  ;;  %v551_v56 = vadd.f32 1.0, %v957_v46  ;;  %v1278_v57 = vpop.f32.mrb[8].mxu1  ;;  %v554_v2 = vmul.f32 -0.5, %v957_v46  ;;  %v557_v5 = vand.u32 2147483647, %v957_v46  ;;  %v1294_v7 = vadd.f32 %v850_v18, %v1217_v31 }
 0x1df   :  { %v542_v62 = vadd.f32 1.0, %v1276_v51  ;;  %v1285_v0 = vpop.f32.mrb[9].mxu1  ;;  %v538_v10 = vmul.f32 %v953_v23, %v537_v52  ;;  %v529_v12 = vmul.f32 %v955_v27, %v528_v54  ;;  %vm1296_vm5 = vcmp.lt.f32.partialorder %v530_v55, 0.0004427343 }
 0x1e0   :  { %970 = vlog2.f32 %v551_v56  ;;  %v545_v24 = vmul.f32 -0.5, %v1276_v51  ;;  %v490_v25 = vmul.f32 1.442695, %v466_v3  ;;  %v555_v29 = vadd.f32 1.0, %v554_v2 }
 0x1e1   :  { %v1291_v4 = vpop.eup %960  ;;  %972 = vlog2.f32 %v542_v62  ;;  %v548_v18 = vand.u32 2147483647, %v1276_v51  ;;  %vm1305_vm6 = vcmp.lt.f32.partialorder %v557_v5, 0.0004427343  ;;  %v453_v30 = vand.u32 2147483647, %v1294_v7 }
 0x1e2   :  { %v963_v8 = vpop.eup %962  ;;  %v569_v16 = vadd.f32 1.0, %v1291_v4  ;;  %974 = vpow2.f32 %v486_v45  ;;  %v572_v39 = vmul.f32 -0.5, %v1291_v4  ;;  %v1319_v49 = vadd.f32 %v1217_v31, %v1259_v22 }
 0x1e3   :  { %v965_v17 = vpop.eup %964  ;;  %v517_v21 = vmul.f32 0.6931472, %v963_v8  ;;  %v469_v48 = vsub.f32 0.0, %v453_v30  ;;  %v546_v52 = vadd.f32 1.0, %v545_v24  ;;  %v1324_v54 = vadd.f32 %v1266_v34, %v1217_v31 }
 0x1e4   :  { %v508_v28 = vmul.f32 0.6931472, %v965_v17  ;;  %976 = vlog2.f32 %v569_v16  ;;  %v452_v22 = vand.u32 2147483647, %v1319_v49  ;;  %v1342_v40 = vadd.f32 %v1217_v31, %v1268_v41 }
 0x1e5   :  { %v523_v23 = vsel %vm1271_vm1, %v520_v58, %v517_v21  ;;  %978 = vpow2.f32 %v492_v6  ;;  %v496_v55 = vmul.f32 1.442695, %v469_v48  ;;  %v455_v34 = vand.u32 2147483647, %v1324_v54 }
 0x1e6   :  { %v967_v36 = vpop.eup %966  ;;  %v651_v37 = vadd.f32 %v523_v23, %v427_v11  ;;  %v514_v38 = vsel %vm1280_vm3, %v511_v59, %v508_v28  ;;  %980 = vpow2.f32 %v490_v25  ;;  %v556_v11 = vmul.f32 %v957_v46, %v555_v29 }
 0x1e7   :  { %v969_v42 = vpop.eup %968  ;;  %v650_v45 = vadd.f32 %v514_v38, %v426_v13  ;;  %v535_v47 = vmul.f32 0.6931472, %v967_v36  ;;  %v575_v13 = vand.u32 2147483647, %v1291_v4  ;;  %v573_v59 = vadd.f32 1.0, %v572_v39 }
 0x1e8   :  { %668 = vst.msk [vmem:[#allocation2 + $0x8] sm:$0xff] %vm666_vm2, %v651_v37  ;;  %v526_v33 = vmul.f32 0.6931472, %v969_v42  ;;  %982 = vpow2.f32 %v496_v55  ;;  %v468_v2 = vsub.f32 0.0, %v452_v22  ;;  %v547_v5 = vmul.f32 %v1276_v51, %v546_v52 }
 0x1e9   :  { %667 = vst.msk [vmem:[#allocation2] sm:$0xff] %vm666_vm2, %v650_v45  ;;  %v541_v35 = vsel %vm1287_vm4, %v538_v10, %v535_v47  ;;  %vm549_vm7 = vcmp.lt.f32.partialorder %v548_v18, 0.0004427343  ;;  %vm1351_vm8 = vcmp.lt.f32.partialorder %v575_v13, 0.0004427343  ;;  %v471_v21 = vsub.f32 0.0, %v455_v34 }
 0x1ea   :  { %v971_v56 = vpop.eup %970  ;;  %v653_v58 = vadd.f32 %v541_v35, %v429_v14  ;;  %v532_v46 = vsel %vm1296_vm5, %v529_v12, %v526_v33  ;;  %v1346_v14 = vadd.f32 %v1278_v57, %v1217_v31  ;;  %v494_v51 = vmul.f32 1.442695, %v468_v2 }
 0x1eb   :  { %v973_v61 = vpop.eup %972  ;;  %v652_v62 = vadd.f32 %v532_v46, %v428_v19  ;;  %v553_v1 = vmul.f32 0.6931472, %v971_v56  ;;  %v574_v57 = vmul.f32 %v1291_v4, %v573_v59  ;;  %v454_v28 = vand.u32 2147483647, %v1342_v40 }
 0x1ec   :  { %670 = vst.msk [vmem:[#allocation2 + $0x18] sm:$0xff] %vm666_vm2, %v653_v58  ;;  %v544_v3 = vmul.f32 0.6931472, %v973_v61  ;;  %v975_v6 = vpop.eup %974  ;;  %984 = vpow2.f32 %v494_v51  ;;  %v457_v50 = vand.u32 2147483647, %v1346_v14  ;;  %v1371_v36 = vadd.f32 %v1217_v31, %v1285_v0 }
 0x1ed   :  { %669 = vst.msk [vmem:[#allocation2 + $0x10] sm:$0xff] %vm666_vm2, %v652_v62  ;;  %v559_v43 = vsel %vm1305_vm6, %v556_v11, %v553_v1  ;;  %v560_v12 = vadd.f32 1.0, %v975_v6  ;;  %v500_v29 = vmul.f32 1.442695, %v471_v21  ;;  %v470_v18 = vsub.f32 0.0, %v454_v28 }
 0x1ee   :  { %v977_v8 = vpop.eup %976  ;;  %v655_v41 = vadd.f32 %v559_v43, %v431_v20  ;;  %v550_v10 = vsel %vm549_vm7, %v547_v5, %v544_v3  ;;  %v473_v23 = vsub.f32 0.0, %v457_v50  ;;  %v566_v42 = vand.u32 2147483647, %v975_v6 }
 0x1ef   :  { %v979_v15 = vpop.eup %978  ;;  %v654_v16 = vadd.f32 %v550_v10, %v430_v32  ;;  %v571_v17 = vmul.f32 0.6931472, %v977_v8  ;;  %986 = vlog2.f32 %v560_v12  ;;  %v563_v32 = vmul.f32 -0.5, %v975_v6 }
 0x1f0   :  { %v981_v24 = vpop.eup %980  ;;  %672 = vst.msk [vmem:[#allocation2 + $0x28] sm:$0xff] %vm666_vm2, %v655_v41  ;;  %v587_v25 = vadd.f32 1.0, %v979_v15  ;;  %v590_v30 = vmul.f32 -0.5, %v979_v15  ;;  %v498_v60 = vmul.f32 1.442695, %v470_v18  ;;  %v432_v33 = vmax.f32 %v1247_v63, 0.0 }
 0x1f1   :  { %671 = vst.msk [vmem:[#allocation2 + $0x20] sm:$0xff] %vm666_vm2, %v654_v16  ;;  %v577_v20 = vsel %vm1351_vm8, %v574_v57, %v571_v17  ;;  %v578_v4 = vadd.f32 1.0, %v981_v24  ;;  %v564_v37 = vadd.f32 1.0, %v563_v32  ;;  %v581_v38 = vmul.f32 -0.5, %v981_v24 }
 0x1f2   :  { %v657_v53 = vadd.f32 %v577_v20, %v433_v44  ;;  %988 = vlog2.f32 %v587_v25  ;;  %v983_v27 = vpop.eup %982  ;;  %v504_v44 = vmul.f32 1.442695, %v473_v23  ;;  %v593_v45 = vand.u32 2147483647, %v979_v15 }
 0x1f3   :  { %990 = vlog2.f32 %v578_v4  ;;  %v605_v39 = vadd.f32 1.0, %v983_v27  ;;  %v456_v47 = vand.u32 2147483647, %v1371_v36  ;;  %v435_v11 = vmax.f32 %v1252_v9, 0.0 }
 0x1f4   :  { %674 = vst.msk [vmem:[#allocation2 + $0x38] sm:$0xff] %vm666_vm2, %v657_v53  ;;  %992 = vpow2.f32 %v500_v29  ;;  %v591_v52 = vadd.f32 1.0, %v590_v30  ;;  %v565_v0 = vmul.f32 %v975_v6, %v564_v37  ;;  %v582_v35 = vadd.f32 1.0, %v581_v38 }
 0x1f5   :  { %994 = vlog2.f32 %v605_v39  ;;  %v584_v13 = vand.u32 2147483647, %v981_v24  ;;  %v608_v56 = vmul.f32 -0.5, %v983_v27  ;;  %v472_v58 = vsub.f32 0.0, %v456_v47 }
 0x1f6   :  { %v985_v48 = vpop.eup %984  ;;  %996 = vpow2.f32 %v498_v60  ;;  %vm567_vm9 = vcmp.lt.f32.partialorder %v566_v42, 0.0004427343  ;;  %vm1376_vm10 = vcmp.lt.f32.partialorder %v593_v45, 0.0004427343  ;;  %v434_v63 = vmax.f32 %v1263_v26, 0.0 }
 0x1f7   :  { %v596_v55 = vadd.f32 1.0, %v985_v48  ;;  %998 = vpow2.f32 %v504_v44  ;;  %v592_v62 = vmul.f32 %v979_v15, %v591_v52  ;;  %v502_v1 = vmul.f32 1.442695, %v472_v58 }
 0x1f8   :  { %v583_v5 = vmul.f32 %v981_v24, %v582_v35  ;;  %vm585_vm11 = vcmp.lt.f32.partialorder %v584_v13, 0.0004427343  ;;  %v609_v43 = vadd.f32 1.0, %v608_v56  ;;  %v599_v19 = vmul.f32 -0.5, %v985_v48 }
 0x1f9   :  { %v987_v31 = vpop.eup %986  ;;  %1000 = vlog2.f32 %v596_v55  ;;  %v611_v41 = vand.u32 2147483647, %v983_v27  ;;  %v437_v24 = vmax.f32 %v1294_v7, 0.0  ;;  %v602_v25 = vand.u32 2147483647, %v985_v48 }
 0x1fa   :  { %v562_v22 = vmul.f32 0.6931472, %v987_v31  ;;  %1002 = vpow2.f32 %v502_v1  ;;  %v610_v17 = vmul.f32 %v983_v27, %v609_v43  ;;  %v600_v21 = vadd.f32 1.0, %v599_v19 }
 0x1fb   :  { %vm612_vm12 = vcmp.lt.f32.partialorder %v611_v41, 0.0004427343  ;;  %v436_v27 = vmax.f32 %v1319_v49, 0.0  ;;  %vm603_vm13 = vcmp.lt.f32.partialorder %v602_v25, 0.0004427343  ;;  %v439_v49 = vmax.f32 %v1324_v54, 0.0 }
 0x1fc   :  { %v989_v46 = vpop.eup %988  ;;  %v568_v34 = vsel %vm567_vm9, %v565_v0, %v562_v22  ;;  %v601_v18 = vmul.f32 %v985_v48, %v600_v21  ;;  %v438_v58 = vmax.f32 %v1342_v40, 0.0 }
 0x1fd   :  { %v991_v9 = vpop.eup %990  ;;  %v589_v61 = vmul.f32 0.6931472, %v989_v46  ;;  %v656_v2 = vadd.f32 %v568_v34, %v432_v33 }
 0x1fe   :  { %v580_v3 = vmul.f32 0.6931472, %v991_v9  ;;  %v993_v51 = vpop.eup %992 }
 0x1ff   :  { %v595_v6 = vsel %vm1376_vm10, %v592_v62, %v589_v61  ;;  %673 = vst.msk [vmem:[#allocation2 + $0x30] sm:$0xff] %vm666_vm2, %v656_v2  ;;  %v623_v57 = vadd.f32 1.0, %v993_v51  ;;  %v995_v12 = vpop.eup %994  ;;  %v626_v32 = vmul.f32 -0.5, %v993_v51  ;;  %v629_v44 = vand.u32 2147483647, %v993_v51 }
 0x200   :  { %v659_v26 = vadd.f32 %v595_v6, %v435_v11  ;;  %v586_v8 = vsel %vm585_vm11, %v583_v5, %v580_v3  ;;  %v997_v15 = vpop.eup %996  ;;  %v607_v16 = vmul.f32 0.6931472, %v995_v12  ;;  %v441_v62 = vmax.f32 %v1346_v14, 0.0 }
 0x201   :  { %v658_v10 = vadd.f32 %v586_v8, %v434_v63  ;;  %1004 = vlog2.f32 %v623_v57  ;;  %v614_v28 = vadd.f32 1.0, %v997_v15  ;;  %v999_v50 = vpop.eup %998  ;;  %v617_v7 = vmul.f32 -0.5, %v997_v15 }
 0x202   :  { %676 = vst.msk [vmem:[#allocation2 + $0x48] sm:$0xff] %vm666_vm2, %v659_v26  ;;  %v613_v20 = vsel %vm612_vm12, %v610_v17, %v607_v16  ;;  %v641_v23 = vadd.f32 1.0, %v999_v50  ;;  %v627_v39 = vadd.f32 1.0, %v626_v32  ;;  %v644_v42 = vmul.f32 -0.5, %v999_v50 }
 0x203   :  { %675 = vst.msk [vmem:[#allocation2 + $0x40] sm:$0xff] %vm666_vm2, %v658_v10  ;;  %v1001_v4 = vpop.eup %1000  ;;  %v661_v53 = vadd.f32 %v613_v20, %v437_v24  ;;  %1006 = vlog2.f32 %v614_v28  ;;  %v618_v47 = vadd.f32 1.0, %v617_v7  ;;  %v620_v11 = vand.u32 2147483647, %v997_v15 }
 0x204   :  { %v598_v29 = vmul.f32 0.6931472, %v1001_v4  ;;  %v1003_v30 = vpop.eup %1002  ;;  %1008 = vlog2.f32 %v641_v23  ;;  %v628_v33 = vmul.f32 %v993_v51, %v627_v39  ;;  %vm630_vm14 = vcmp.lt.f32.partialorder %v629_v44, 0.0004427343 }
 0x205   :  { %678 = vst.msk [vmem:[#allocation2 + $0x58] sm:$0xff] %vm666_vm2, %v661_v53  ;;  %v632_v60 = vadd.f32 1.0, %v1003_v30  ;;  %v635_v52 = vmul.f32 -0.5, %v1003_v30  ;;  %v645_v35 = vadd.f32 1.0, %v644_v42  ;;  %v619_v22 = vmul.f32 %v997_v15, %v618_v47 }
 0x206   :  { %v604_v37 = vsel %vm603_vm13, %v601_v18, %v598_v29  ;;  %v647_v56 = vand.u32 2147483647, %v999_v50  ;;  %vm621_vm15 = vcmp.lt.f32.partialorder %v620_v11, 0.0004427343  ;;  %v638_v61 = vand.u32 2147483647, %v1003_v30 }
 0x207   :  { %v660_v38 = vadd.f32 %v604_v37, %v436_v27  ;;  %1010 = vlog2.f32 %v632_v60  ;;  %v636_v63 = vadd.f32 1.0, %v635_v52  ;;  %v646_v54 = vmul.f32 %v999_v50, %v645_v35 }
 0x208   :  { %vm648_vm0 = vcmp.lt.f32.partialorder %v647_v56, 0.0004427343  ;;  %v440_v6 = vmax.f32 %v1371_v36, 0.0  ;;  %vm639_vm1 = vcmp.lt.f32.partialorder %v638_v61, 0.0004427343 }
 0x209   :  { %677 = vst.msk [vmem:[#allocation2 + $0x50] sm:$0xff] %vm666_vm2, %v660_v38  ;;  %v637_v40 = vmul.f32 %v1003_v30, %v636_v63 }
 0x20b   :  { %v1005_v45 = vpop.eup %1004 }
 0x20c   :  { %v625_v48 = vmul.f32 0.6931472, %v1005_v45 }
 0x20d   :  { %v1007_v31 = vpop.eup %1006 }
 0x20e   :  { %v631_v0 = vsel %vm630_vm14, %v628_v33, %v625_v48  ;;  %v616_v55 = vmul.f32 0.6931472, %v1007_v31  ;;  %v1009_v46 = vpop.eup %1008 }
 0x20f   :  { %v663_v13 = vadd.f32 %v631_v0, %v439_v49  ;;  %v643_v34 = vmul.f32 0.6931472, %v1009_v46 }
 0x210   :  { %v622_v59 = vsel %vm621_vm15, %v619_v22, %v616_v55 }
 0x211   :  { %680 = vst.msk [vmem:[#allocation2 + $0x68] sm:$0xff] %vm666_vm2, %v663_v13  ;;  %v662_v9 = vadd.f32 %v622_v59, %v438_v58  ;;  %v1011_v1 = vpop.eup %1010  ;;  %v649_v2 = vsel %vm648_vm0, %v646_v54, %v643_v34 }
 0x212   :  { %v665_v3 = vadd.f32 %v649_v2, %v441_v62  ;;  %v634_v5 = vmul.f32 0.6931472, %v1011_v1 }
 0x213   :  { %679 = vst.msk [vmem:[#allocation2 + $0x60] sm:$0xff] %vm666_vm2, %v662_v9 }
 0x214   :  { %682 = vst.msk [vmem:[#allocation2 + $0x78] sm:$0xff] %vm666_vm2, %v665_v3  ;;  %v640_v43 = vsel %vm639_vm1, %v637_v40, %v634_v5 }
 0x215   :  { %v664_v19 = vadd.f32 %v640_v43, %v440_v6 }
 0x217   :  { %681 = vst.msk [vmem:[#allocation2 + $0x70] sm:$0xff] %vm666_vm2, %v664_v19 }
 0x218   :  { %687 = vsyncadd [#allocation3], 1920  ;;  %s1036_s4 = smov [#allocation2]  }
 0x219   :  { %s688_s13 = sshll.u32 %s1036_s4, 4  ;;  %s689_s13 = int_to_ptr.vmem [resolvable:$true] %s688_s13 }
 0x21a   :  { %s1012_s14 = scalar_lea.vmem %s689_s13, 128  ;;  %s1016_s15 = scalar_lea.vmem %s689_s13, 2048 }
 0x21b   :  { %p1013_p0 = scmp.ne.s32.totalorder %s689_s13, %s1012_s14  ;;  %p1017_p1 = scmp.lt.s32.totalorder %s689_s13, %s689_s13 }
 0x21c   :  { %p1018_p2 = scmp.lt.s32.totalorder %s1016_s15, %s1012_s14 }
 0x21e   :  { %p1019_p3 = por %p1018_p2, %p1017_p1 }
 0x220   :  { %p1020_p4 = pnand %p1019_p3, %p1013_p0 }
 0x222   :  { %1023 = shalt.err (!%p1020_p4)
}
 0x223   :  { %s1024_s18 = scalar_lea.hbm %s1415_s5, 128 }
 0x224   :  { %p1025_p5 = scmp.ne.s32.totalorder %s1415_s5, %s1024_s18  ;;  %p1028_p6 = scmp.lt.u32.totalorder %s1024_s18, %s1415_s5 }
 0x226   :  { %p1030_p7 = pnand %p1028_p6, %p1025_p5 }
 0x228   :  { %1033 = shalt.err (!%p1030_p7)
}
 0x229   :  { %s1037_s23 = smov 128   ;;  %s1038_s24 = smov 8  }
 0x22a   :  { %694 = dma.vmem_to_hbm [thread:$0]  %s689_s13, 128, %s1415_s5, [#allocation3], %s1037_s23, %s1037_s23, %s1038_s24  }
 0x22b   :  { %1034 = dma.done.wait [#allocation3], 2048  }
 0x22c   :  { %1035 = vsyncadd [#allocation3], 4294965248 }
 0x22d   :  { %698 = vsyncpa [#allocation3], 1 }

// kernel: tpu_custom_call.1
= control target key start
LH: loop header
LB: loop body
LE: loop exit
PB: predicated region body
PF: predicated region fallthrough
CT: control target
= control target key end

     0   :  { %10 = vsyncpa [#allocation3], 0  ;;  %vm48_vm0 = vcmask 261120   ;;  %vm666_vm2 = vcmask 130048   ;;  %s1410_s0 = inlined_call_operand.vmem [shape: f32[8,32], index: 0, kind: input, shape index: {}]   ;;  %s1411_s1 = inlined_call_operand.vmem [shape: f32[32,128], index: 1, kind: input, shape index: {}]   ;;  %s1412_s2 = inlined_call_operand.vmem [shape: f32[1,128], index: 2, kind: input, shape index: {}]   ;;  %s1413_s3 = inlined_call_operand.vmem [shape: f32[128,16], index: 3, kind: input, shape index: {}]   ;;  %s1414_s4 = inlined_call_operand.vmem [shape: f32[1,16], index: 4, kind: input, shape index: {}]   ;;  %s1415_s5 = inlined_call_operand.hbm [shape: f32[8,16], index: 5, kind: output, shape index: {}]  }
   0x1   :  { %v37_v0 = vld [vmem:[%s1411_s1] sm:$0xff]  ;;  %v38_v1 = vld [vmem:[%s1411_s1 + $0x8] sm:$0xff]  ;;  %v39_v3 = vld [vmem:[%s1411_s1 + $0x10] sm:$0xff] }
   0x2   :  { %v857_v2 = vpack.c.bf16 %v38_v1, %v37_v0  ;;  %v40_v4 = vld [vmem:[%s1411_s1 + $0x18] sm:$0xff]  ;;  %v21_v5 = vld [vmem:[%s1410_s0] sm:$0xff]  ;;  %v259_v8 = vld [vmem:[%s1413_s3 + $0x8] sm:$0xff] }
   0x3   :  { %v861_v6 = vpack.c.bf16 %v40_v4, %v39_v3  ;;  %777 = vmatprep.mubr.msk.f32.mxu0 %vm48_vm0, %v21_v5  ;;  %v258_v7 = vld [vmem:[%s1413_s3] sm:$0xff]  ;;  %v260_v9 = vld [vmem:[%s1413_s3 + $0x10] sm:$0xff]  ;;  %v22_v10 = vld [vmem:[%s1410_s0 + $0x8] sm:$0xff] }
   0x4   :  { %858 = vmatprep.subr.bf16.mxu0 %v857_v2  ;;  %v865_v11 = vpack.c.bf16 %v259_v8, %v258_v7  ;;  %v261_v12 = vld [vmem:[%s1413_s3 + $0x18] sm:$0xff]  ;;  %v23_v13 = vld [vmem:[%s1410_s0 + $0x10] sm:$0xff]  ;;  %v262_v15 = vld [vmem:[%s1413_s3 + $0x20] sm:$0xff] }
   0x5   :  { %860 = vmatpush3.bf16.msra.mxu0 %v857_v2  ;;  %v869_v14 = vpack.c.bf16 %v261_v12, %v260_v9  ;;  %v263_v16 = vld [vmem:[%s1413_s3 + $0x28] sm:$0xff]  ;;  %v24_v17 = vld [vmem:[%s1410_s0 + $0x18] sm:$0xff]  ;;  %v25_v18 = vld [vmem:[%s1410_s0 + $0x20] sm:$0xff] }
   0x6   :  { %862 = vmatprep.subr.bf16.mxu0 %v861_v6  ;;  %897 = vmatprep.subr.bf16.mxu1 %v865_v11  ;;  %v873_v19 = vpack.c.bf16 %v263_v16, %v262_v15  ;;  %v264_v20 = vld [vmem:[%s1413_s3 + $0x30] sm:$0xff]  ;;  %v265_v21 = vld [vmem:[%s1413_s3 + $0x38] sm:$0xff]  ;;  %v26_v22 = vld [vmem:[%s1410_s0 + $0x28] sm:$0xff] }
   0x7   :  { %905 = vmatpush3.bf16.msra.mxu1 %v865_v11  ;;  %v27_v23 = vld [vmem:[%s1410_s0 + $0x30] sm:$0xff]  ;;  %v877_v24 = vpack.c.bf16 %v265_v21, %v264_v20  ;;  %v28_v25 = vld [vmem:[%s1410_s0 + $0x38] sm:$0xff]  ;;  %v29_v26 = vld [vmem:[%s1410_s0 + $0x40] sm:$0xff] }
   0x8   :  { %898 = vmatprep.subr.bf16.mxu1 %v869_v14  ;;  %v30_v27 = vld [vmem:[%s1410_s0 + $0x48] sm:$0xff]  ;;  %v31_v28 = vld [vmem:[%s1410_s0 + $0x50] sm:$0xff]  ;;  %v32_v29 = vld [vmem:[%s1410_s0 + $0x58] sm:$0xff] }
   0x9   :  { %864 = vmatpush3.bf16.msra.mxu0 %v861_v6  ;;  %v33_v30 = vld [vmem:[%s1410_s0 + $0x60] sm:$0xff]  ;;  %v34_v31 = vld [vmem:[%s1410_s0 + $0x68] sm:$0xff]  ;;  %v35_v32 = vld [vmem:[%s1410_s0 + $0x70] sm:$0xff] }
   0xa   :  { %866 = vmatprep.subr.bf16.mxu0 %v865_v11  ;;  %v36_v33 = vld [vmem:[%s1410_s0 + $0x78] sm:$0xff]  ;;  %v266_v34 = vld [vmem:[%s1413_s3 + $0x40] sm:$0xff]  ;;  %v267_v35 = vld [vmem:[%s1413_s3 + $0x48] sm:$0xff] }
   0xb   :  { %906 = vmatpush3.bf16.msra.mxu1 %v869_v14  ;;  %v881_v36 = vpack.c.bf16 %v267_v35, %v266_v34  ;;  %v268_v37 = vld [vmem:[%s1413_s3 + $0x50] sm:$0xff]  ;;  %v269_v38 = vld [vmem:[%s1413_s3 + $0x58] sm:$0xff]  ;;  %v270_v40 = vld [vmem:[%s1413_s3 + $0x60] sm:$0xff] }
   0xc   :  { %778 = vmatmul.mubr.msk.f32.vlgmr.msra.gmra.mrb[0].mxu0 %vm48_vm0, %v22_v10  ;;  %899 = vmatprep.subr.bf16.mxu1 %v873_v19  ;;  %v885_v39 = vpack.c.bf16 %v269_v38, %v268_v37  ;;  %v271_v41 = vld [vmem:[%s1413_s3 + $0x68] sm:$0xff]  ;;  %v272_v43 = vld [vmem:[%s1413_s3 + $0x70] sm:$0xff]  ;;  %v273_v44 = vld [vmem:[%s1413_s3 + $0x78] sm:$0xff] }
   0xd   :  { %780 = vmatprep.mubr.msk.f32.mxu0 %vm48_vm0, %v23_v13  ;;  %868 = vmatpush3.bf16.msra.mxu0 %v865_v11  ;;  %v889_v42 = vpack.c.bf16 %v271_v41, %v270_v40  ;;  %v893_v45 = vpack.c.bf16 %v273_v44, %v272_v43  ;;  %v1196_v46 = vld [vmem:[%s1412_s2] ss:$0 sm:$0xff] }
   0xe   :  { %870 = vmatprep.subr.bf16.mxu0 %v869_v14 }
   0xf   :  { %907 = vmatpush3.bf16.msra.mxu1 %v873_v19 }
  0x10   :  { %781 = vmatmul.mubr.msk.f32.gmra.mrb[2].mxu0 %vm48_vm0, %v24_v17  ;;  %900 = vmatprep.subr.bf16.mxu1 %v877_v24 }
  0x11   :  { %783 = vmatprep.mubr.msk.f32.mxu0 %vm48_vm0, %v25_v18  ;;  %872 = vmatpush3.bf16.msra.mxu0 %v869_v14 }
  0x12   :  { %874 = vmatprep.subr.bf16.mxu0 %v873_v19 }
  0x13   :  { %908 = vmatpush3.bf16.msra.mxu1 %v877_v24 }
  0x14   :  { %784 = vmatmul.mubr.msk.f32.gmra.mrb[4].mxu0 %vm48_vm0, %v26_v22  ;;  %901 = vmatprep.subr.bf16.mxu1 %v881_v36 }
  0x15   :  { %786 = vmatprep.mubr.msk.f32.mxu0 %vm48_vm0, %v27_v23  ;;  %876 = vmatpush3.bf16.msra.mxu0 %v873_v19 }
  0x16   :  { %878 = vmatprep.subr.bf16.mxu0 %v877_v24 }
  0x17   :  { %909 = vmatpush3.bf16.msra.mxu1 %v881_v36 }
  0x18   :  { %787 = vmatmul.mubr.msk.f32.gmra.mrb[6].mxu0 %vm48_vm0, %v28_v25  ;;  %902 = vmatprep.subr.bf16.mxu1 %v885_v39 }
  0x19   :  { %789 = vmatprep.mubr.msk.f32.mxu0 %vm48_vm0, %v29_v26  ;;  %880 = vmatpush3.bf16.msra.mxu0 %v877_v24 }
  0x1a   :  { %882 = vmatprep.subr.bf16.mxu0 %v881_v36 }
  0x1b   :  { %910 = vmatpush3.bf16.msra.mxu1 %v885_v39 }
  0x1c   :  { %790 = vmatmul.mubr.msk.f32.gmra.mrb[8].mxu0 %vm48_vm0, %v30_v27  ;;  %903 = vmatprep.subr.bf16.mxu1 %v889_v42 }
  0x1d   :  { %792 = vmatprep.mubr.msk.f32.mxu0 %vm48_vm0, %v31_v28  ;;  %884 = vmatpush3.bf16.msra.mxu0 %v881_v36 }
  0x1e   :  { %886 = vmatprep.subr.bf16.mxu0 %v885_v39 }
  0x1f   :  { %911 = vmatpush3.bf16.msra.mxu1 %v889_v42 }
  0x20   :  { %793 = vmatmul.mubr.msk.f32.gmra.mrb[10].mxu0 %vm48_vm0, %v32_v29  ;;  %904 = vmatprep.subr.bf16.mxu1 %v893_v45 }
  0x21   :  { %795 = vmatprep.mubr.msk.f32.mxu0 %vm48_vm0, %v33_v30  ;;  %888 = vmatpush3.bf16.msra.mxu0 %v885_v39 }
  0x22   :  { %890 = vmatprep.subr.bf16.mxu0 %v889_v42 }
  0x23   :  { %912 = vmatpush3.bf16.msra.mxu1 %v893_v45 }
  0x24   :  { %796 = vmatmul.mubr.msk.f32.gmra.mrb[12].mxu0 %vm48_vm0, %v34_v31  ;;  %v1217_v31 = vld [vmem:[%s1414_s4] ss:$0 sm:$0xff] }
  0x25   :  { %798 = vmatprep.mubr.msk.f32.mxu0 %vm48_vm0, %v35_v32  ;;  %892 = vmatpush3.bf16.msra.mxu0 %v889_v42 }
  0x26   :  { %894 = vmatprep.subr.bf16.mxu0 %v893_v45 }
  0x28   :  { %799 = vmatmul.mubr.msk.f32.gmra.mrb[14].mxu0 %vm48_vm0, %v36_v33 }
  0x29   :  { %896 = vmatpush3.bf16.msra.mxu0 %v893_v45 }
  0xdf   :  { %v779_v47 = vpop.f32.mrb[0].mxu0 }
  0xe0   :  { %v169_v48 = vadd.f32 %v779_v47, %v1196_v46  ;;  %v163_v49 = vpop.f32.mrb[1].mxu0 }
  0xe1   :  { %v164_v50 = vadd.f32 %v1196_v46, %v163_v49 }
  0xe3   :  { %916 = vtanh.f32 %v164_v50  ;;  %v782_v51 = vpop.f32.mrb[2].mxu0 }
  0xe4   :  { %918 = vtanh.f32 %v169_v48  ;;  %v179_v52 = vadd.f32 %v782_v51, %v1196_v46  ;;  %v173_v53 = vpop.f32.mrb[3].mxu0 }
  0xe5   :  { %v174_v54 = vadd.f32 %v1196_v46, %v173_v53 }
  0xe7   :  { %920 = vtanh.f32 %v174_v54  ;;  %v785_v55 = vpop.f32.mrb[4].mxu0 }
  0xe8   :  { %922 = vtanh.f32 %v179_v52  ;;  %v189_v56 = vadd.f32 %v785_v55, %v1196_v46  ;;  %v183_v57 = vpop.f32.mrb[5].mxu0 }
  0xe9   :  { %v184_v58 = vadd.f32 %v1196_v46, %v183_v57 }
  0xeb   :  { %924 = vtanh.f32 %v184_v58  ;;  %v788_v59 = vpop.f32.mrb[6].mxu0 }
  0xec   :  { %926 = vtanh.f32 %v189_v56  ;;  %v199_v60 = vadd.f32 %v788_v59, %v1196_v46  ;;  %v193_v61 = vpop.f32.mrb[7].mxu0 }
  0xed   :  { %v917_v62 = vpop.eup %916  ;;  %v194_v63 = vadd.f32 %v1196_v46, %v193_v61 }
  0xee   :  { %v919_v0 = vpop.eup %918  ;;  %833 = vmatprep.mubr.f32.mxu0 %v917_v62 }
  0xef   :  { %928 = vtanh.f32 %v194_v63  ;;  %v791_v1 = vpop.f32.mrb[8].mxu0  ;;  %834 = vmatmul.mubr.f32.vlgmr.msra.gmra.mrb[16].mxu0 %v919_v0 }
  0xf0   :  { %930 = vtanh.f32 %v199_v60  ;;  %v209_v2 = vadd.f32 %v791_v1, %v1196_v46  ;;  %v203_v3 = vpop.f32.mrb[9].mxu0 }
  0xf1   :  { %v921_v4 = vpop.eup %920  ;;  %v204_v5 = vadd.f32 %v1196_v46, %v203_v3 }
  0xf2   :  { %v923_v6 = vpop.eup %922  ;;  %836 = vmatprep.mubr.f32.mxu0 %v921_v4 }
  0xf3   :  { %932 = vtanh.f32 %v204_v5  ;;  %v794_v7 = vpop.f32.mrb[10].mxu0  ;;  %837 = vmatmul.mubr.f32.gmra.mrb[18].mxu0 %v923_v6 }
  0xf4   :  { %934 = vtanh.f32 %v209_v2  ;;  %v219_v8 = vadd.f32 %v794_v7, %v1196_v46  ;;  %v213_v9 = vpop.f32.mrb[11].mxu0 }
  0xf5   :  { %v925_v10 = vpop.eup %924  ;;  %v214_v11 = vadd.f32 %v1196_v46, %v213_v9 }
  0xf6   :  { %v927_v12 = vpop.eup %926  ;;  %839 = vmatprep.mubr.f32.mxu0 %v925_v10 }
  0xf7   :  { %936 = vtanh.f32 %v214_v11  ;;  %v797_v13 = vpop.f32.mrb[12].mxu0  ;;  %840 = vmatmul.mubr.f32.gmra.mrb[20].mxu0 %v927_v12 }
  0xf8   :  { %938 = vtanh.f32 %v219_v8  ;;  %v229_v14 = vadd.f32 %v797_v13, %v1196_v46  ;;  %v223_v15 = vpop.f32.mrb[13].mxu0 }
  0xf9   :  { %v929_v16 = vpop.eup %928  ;;  %v224_v17 = vadd.f32 %v1196_v46, %v223_v15 }
  0xfa   :  { %v931_v18 = vpop.eup %930  ;;  %842 = vmatprep.mubr.f32.mxu1 %v929_v16 }
  0xfb   :  { %940 = vtanh.f32 %v224_v17  ;;  %v800_v19 = vpop.f32.mrb[14].mxu0  ;;  %843 = vmatmul.mubr.f32.vlgmr.msra.gmra.mrb[0].mxu1 %v931_v18 }
  0xfc   :  { %942 = vtanh.f32 %v229_v14  ;;  %v239_v20 = vadd.f32 %v800_v19, %v1196_v46  ;;  %v233_v21 = vpop.f32.mrb[15].mxu0 }
  0xfd   :  { %v933_v22 = vpop.eup %932  ;;  %v234_v23 = vadd.f32 %v1196_v46, %v233_v21 }
  0xfe   :  { %v935_v24 = vpop.eup %934  ;;  %845 = vmatprep.mubr.f32.mxu1 %v933_v22 }
  0xff   :  { %944 = vtanh.f32 %v234_v23  ;;  %846 = vmatmul.mubr.f32.gmra.mrb[2].mxu1 %v935_v24 }
 0x100   :  { %946 = vtanh.f32 %v239_v20 }
 0x101   :  { %v937_v25 = vpop.eup %936 }
 0x102   :  { %v939_v26 = vpop.eup %938  ;;  %848 = vmatprep.mubr.f32.mxu1 %v937_v25 }
 0x103   :  { %849 = vmatmul.mubr.f32.gmra.mrb[4].mxu1 %v939_v26 }
 0x105   :  { %v941_v27 = vpop.eup %940 }
 0x106   :  { %v943_v28 = vpop.eup %942  ;;  %851 = vmatprep.mubr.f32.mxu1 %v941_v27 }
 0x107   :  { %852 = vmatmul.mubr.f32.gmra.mrb[6].mxu1 %v943_v28 }
 0x109   :  { %v945_v29 = vpop.eup %944 }
 0x10a   :  { %v947_v30 = vpop.eup %946  ;;  %854 = vmatprep.mubr.f32.mxu1 %v945_v29 }
 0x10b   :  { %855 = vmatmul.mubr.f32.gmra.mrb[8].mxu1 %v947_v30 }
 0x1c2   :  { %v835_v32 = vpop.f32.mrb[16].mxu0 }
 0x1c3   :  { %v1220_v33 = vadd.f32 %v835_v32, %v1217_v31  ;;  %v347_v34 = vpop.f32.mrb[17].mxu0 }
 0x1c4   :  { %v1223_v35 = vadd.f32 %v1217_v31, %v347_v34 }
 0x1c5   :  { %v443_v36 = vand.u32 2147483647, %v1220_v33  ;;  %v427_v11 = vmax.f32 %v1220_v33, 0.0 }
 0x1c6   :  { %v442_v37 = vand.u32 2147483647, %v1223_v35  ;;  %v838_v38 = vpop.f32.mrb[18].mxu0  ;;  %v426_v13 = vmax.f32 %v1223_v35, 0.0 }
 0x1c7   :  { %v459_v39 = vsub.f32 0.0, %v443_v36  ;;  %v1228_v40 = vadd.f32 %v838_v38, %v1217_v31  ;;  %v357_v41 = vpop.f32.mrb[19].mxu0 }
 0x1c8   :  { %v458_v42 = vsub.f32 0.0, %v442_v37  ;;  %v1231_v43 = vadd.f32 %v1217_v31, %v357_v41 }
 0x1c9   :  { %v476_v44 = vmul.f32 1.442695, %v459_v39  ;;  %v445_v45 = vand.u32 2147483647, %v1228_v40  ;;  %v429_v14 = vmax.f32 %v1228_v40, 0.0 }
 0x1ca   :  { %v474_v46 = vmul.f32 1.442695, %v458_v42  ;;  %v444_v47 = vand.u32 2147483647, %v1231_v43  ;;  %v841_v48 = vpop.f32.mrb[20].mxu0  ;;  %v428_v19 = vmax.f32 %v1231_v43, 0.0 }
 0x1cb   :  { %948 = vpow2.f32 %v476_v44  ;;  %v461_v49 = vsub.f32 0.0, %v445_v45  ;;  %v1236_v50 = vadd.f32 %v841_v48, %v1217_v31  ;;  %v367_v51 = vpop.f32.mrb[21].mxu0 }
 0x1cc   :  { %950 = vpow2.f32 %v474_v46  ;;  %v460_v52 = vsub.f32 0.0, %v444_v47  ;;  %v1239_v53 = vadd.f32 %v1217_v31, %v367_v51 }
 0x1cd   :  { %v480_v54 = vmul.f32 1.442695, %v461_v49  ;;  %v447_v55 = vand.u32 2147483647, %v1236_v50  ;;  %v431_v20 = vmax.f32 %v1236_v50, 0.0 }
 0x1ce   :  { %v478_v56 = vmul.f32 1.442695, %v460_v52  ;;  %v446_v57 = vand.u32 2147483647, %v1239_v53  ;;  %v844_v58 = vpop.f32.mrb[0].mxu1  ;;  %v430_v32 = vmax.f32 %v1239_v53, 0.0 }
 0x1cf   :  { %952 = vpow2.f32 %v480_v54  ;;  %v463_v59 = vsub.f32 0.0, %v447_v55  ;;  %v1244_v60 = vadd.f32 %v844_v58, %v1217_v31  ;;  %v377_v61 = vpop.f32.mrb[1].mxu1 }
 0x1d0   :  { %954 = vpow2.f32 %v478_v56  ;;  %v462_v62 = vsub.f32 0.0, %v446_v57  ;;  %v1247_v63 = vadd.f32 %v1217_v31, %v377_v61 }
 0x1d1   :  { %v484_v0 = vmul.f32 1.442695, %v463_v59  ;;  %v449_v1 = vand.u32 2147483647, %v1244_v60  ;;  %v433_v44 = vmax.f32 %v1244_v60, 0.0 }
 0x1d2   :  { %v482_v2 = vmul.f32 1.442695, %v462_v62  ;;  %v847_v3 = vpop.f32.mrb[2].mxu1  ;;  %v448_v6 = vand.u32 2147483647, %v1247_v63 }
 0x1d3   :  { %956 = vpow2.f32 %v484_v0  ;;  %v465_v4 = vsub.f32 0.0, %v449_v1  ;;  %v387_v5 = vpop.f32.mrb[3].mxu1  ;;  %v1252_v9 = vadd.f32 %v847_v3, %v1217_v31 }
 0x1d4   :  { %958 = vpow2.f32 %v482_v2  ;;  %v464_v21 = vsub.f32 0.0, %v448_v6  ;;  %v1263_v26 = vadd.f32 %v1217_v31, %v387_v5 }
 0x1d5   :  { %v949_v7 = vpop.eup %948  ;;  %v488_v8 = vmul.f32 1.442695, %v465_v4  ;;  %v451_v25 = vand.u32 2147483647, %v1252_v9 }
 0x1d6   :  { %v951_v10 = vpop.eup %950  ;;  %v515_v12 = vadd.f32 1.0, %v949_v7  ;;  %v518_v15 = vmul.f32 -0.5, %v949_v7  ;;  %v850_v18 = vpop.f32.mrb[4].mxu1  ;;  %v521_v24 = vand.u32 2147483647, %v949_v7 }
 0x1d7   :  { %v506_v16 = vadd.f32 1.0, %v951_v10  ;;  %v509_v17 = vmul.f32 -0.5, %v951_v10  ;;  %960 = vpow2.f32 %v488_v8  ;;  %v1259_v22 = vpop.f32.mrb[5].mxu1  ;;  %v512_v28 = vand.u32 2147483647, %v951_v10 }
 0x1d8   :  { %962 = vlog2.f32 %v515_v12  ;;  %v519_v36 = vadd.f32 1.0, %v518_v15  ;;  %v486_v45 = vmul.f32 1.442695, %v464_v21  ;;  %vm1271_vm1 = vcmp.lt.f32.partialorder %v521_v24, 0.0004427343 }
 0x1d9   :  { %v953_v23 = vpop.eup %952  ;;  %964 = vlog2.f32 %v506_v16  ;;  %v510_v37 = vadd.f32 1.0, %v509_v17  ;;  %v467_v48 = vsub.f32 0.0, %v451_v25  ;;  %v450_v49 = vand.u32 2147483647, %v1263_v26 }
 0x1da   :  { %v955_v27 = vpop.eup %954  ;;  %v533_v29 = vadd.f32 1.0, %v953_v23  ;;  %v536_v30 = vmul.f32 -0.5, %v953_v23  ;;  %v1266_v34 = vpop.f32.mrb[6].mxu1  ;;  %v539_v42 = vand.u32 2147483647, %v953_v23  ;;  %v520_v58 = vmul.f32 %v949_v7, %v519_v36 }
 0x1db   :  { %v524_v38 = vadd.f32 1.0, %v955_v27  ;;  %v527_v39 = vmul.f32 -0.5, %v955_v27  ;;  %v1268_v41 = vpop.f32.mrb[7].mxu1  ;;  %v530_v55 = vand.u32 2147483647, %v955_v27  ;;  %v511_v59 = vmul.f32 %v951_v10, %v510_v37 }
 0x1dc   :  { %966 = vlog2.f32 %v533_v29  ;;  %v537_v52 = vadd.f32 1.0, %v536_v30  ;;  %vm1280_vm3 = vcmp.lt.f32.partialorder %v512_v28, 0.0004427343  ;;  %vm1287_vm4 = vcmp.lt.f32.partialorder %v539_v42, 0.0004427343 }
 0x1dd   :  { %v957_v46 = vpop.eup %956  ;;  %968 = vlog2.f32 %v524_v38  ;;  %v528_v54 = vadd.f32 1.0, %v527_v39  ;;  %v466_v3 = vsub.f32 0.0, %v450_v49  ;;  %v492_v6 = vmul.f32 1.442695, %v467_v48 }
 0x1de   :  { %v1276_v51 = vpop.eup %958  ;;  %v551_v56 = vadd.f32 1.0, %v957_v46  ;;  %v1278_v57 = vpop.f32.mrb[8].mxu1  ;;  %v554_v2 = vmul.f32 -0.5, %v957_v46  ;;  %v557_v5 = vand.u32 2147483647, %v957_v46  ;;  %v1294_v7 = vadd.f32 %v850_v18, %v1217_v31 }
 0x1df   :  { %v542_v62 = vadd.f32 1.0, %v1276_v51  ;;  %v1285_v0 = vpop.f32.mrb[9].mxu1  ;;  %v538_v10 = vmul.f32 %v953_v23, %v537_v52  ;;  %v529_v12 = vmul.f32 %v955_v27, %v528_v54  ;;  %vm1296_vm5 = vcmp.lt.f32.partialorder %v530_v55, 0.0004427343 }
 0x1e0   :  { %970 = vlog2.f32 %v551_v56  ;;  %v545_v24 = vmul.f32 -0.5, %v1276_v51  ;;  %v490_v25 = vmul.f32 1.442695, %v466_v3  ;;  %v555_v29 = vadd.f32 1.0, %v554_v2 }
 0x1e1   :  { %v1291_v4 = vpop.eup %960  ;;  %972 = vlog2.f32 %v542_v62  ;;  %v548_v18 = vand.u32 2147483647, %v1276_v51  ;;  %vm1305_vm6 = vcmp.lt.f32.partialorder %v557_v5, 0.0004427343  ;;  %v453_v30 = vand.u32 2147483647, %v1294_v7 }
 0x1e2   :  { %v963_v8 = vpop.eup %962  ;;  %v569_v16 = vadd.f32 1.0, %v1291_v4  ;;  %974 = vpow2.f32 %v486_v45  ;;  %v572_v39 = vmul.f32 -0.5, %v1291_v4  ;;  %v1319_v49 = vadd.f32 %v1217_v31, %v1259_v22 }
 0x1e3   :  { %v965_v17 = vpop.eup %964  ;;  %v517_v21 = vmul.f32 0.6931472, %v963_v8  ;;  %v469_v48 = vsub.f32 0.0, %v453_v30  ;;  %v546_v52 = vadd.f32 1.0, %v545_v24  ;;  %v1324_v54 = vadd.f32 %v1266_v34, %v1217_v31 }
 0x1e4   :  { %v508_v28 = vmul.f32 0.6931472, %v965_v17  ;;  %976 = vlog2.f32 %v569_v16  ;;  %v452_v22 = vand.u32 2147483647, %v1319_v49  ;;  %v1342_v40 = vadd.f32 %v1217_v31, %v1268_v41 }
 0x1e5   :  { %v523_v23 = vsel %vm1271_vm1, %v520_v58, %v517_v21  ;;  %978 = vpow2.f32 %v492_v6  ;;  %v496_v55 = vmul.f32 1.442695, %v469_v48  ;;  %v455_v34 = vand.u32 2147483647, %v1324_v54 }
 0x1e6   :  { %v967_v36 = vpop.eup %966  ;;  %v651_v37 = vadd.f32 %v523_v23, %v427_v11  ;;  %v514_v38 = vsel %vm1280_vm3, %v511_v59, %v508_v28  ;;  %980 = vpow2.f32 %v490_v25  ;;  %v556_v11 = vmul.f32 %v957_v46, %v555_v29 }
 0x1e7   :  { %v969_v42 = vpop.eup %968  ;;  %v650_v45 = vadd.f32 %v514_v38, %v426_v13  ;;  %v535_v47 = vmul.f32 0.6931472, %v967_v36  ;;  %v575_v13 = vand.u32 2147483647, %v1291_v4  ;;  %v573_v59 = vadd.f32 1.0, %v572_v39 }
 0x1e8   :  { %668 = vst.msk [vmem:[#allocation2 + $0x8] sm:$0xff] %vm666_vm2, %v651_v37  ;;  %v526_v33 = vmul.f32 0.6931472, %v969_v42  ;;  %982 = vpow2.f32 %v496_v55  ;;  %v468_v2 = vsub.f32 0.0, %v452_v22  ;;  %v547_v5 = vmul.f32 %v1276_v51, %v546_v52 }
 0x1e9   :  { %667 = vst.msk [vmem:[#allocation2] sm:$0xff] %vm666_vm2, %v650_v45  ;;  %v541_v35 = vsel %vm1287_vm4, %v538_v10, %v535_v47  ;;  %vm549_vm7 = vcmp.lt.f32.partialorder %v548_v18, 0.0004427343  ;;  %vm1351_vm8 = vcmp.lt.f32.partialorder %v575_v13, 0.0004427343  ;;  %v471_v21 = vsub.f32 0.0, %v455_v34 }
 0x1ea   :  { %v971_v56 = vpop.eup %970  ;;  %v653_v58 = vadd.f32 %v541_v35, %v429_v14  ;;  %v532_v46 = vsel %vm1296_vm5, %v529_v12, %v526_v33  ;;  %v1346_v14 = vadd.f32 %v1278_v57, %v1217_v31  ;;  %v494_v51 = vmul.f32 1.442695, %v468_v2 }
 0x1eb   :  { %v973_v61 = vpop.eup %972  ;;  %v652_v62 = vadd.f32 %v532_v46, %v428_v19  ;;  %v553_v1 = vmul.f32 0.6931472, %v971_v56  ;;  %v574_v57 = vmul.f32 %v1291_v4, %v573_v59  ;;  %v454_v28 = vand.u32 2147483647, %v1342_v40 }
 0x1ec   :  { %670 = vst.msk [vmem:[#allocation2 + $0x18] sm:$0xff] %vm666_vm2, %v653_v58  ;;  %v544_v3 = vmul.f32 0.6931472, %v973_v61  ;;  %v975_v6 = vpop.eup %974  ;;  %984 = vpow2.f32 %v494_v51  ;;  %v457_v50 = vand.u32 2147483647, %v1346_v14  ;;  %v1371_v36 = vadd.f32 %v1217_v31, %v1285_v0 }
 0x1ed   :  { %669 = vst.msk [vmem:[#allocation2 + $0x10] sm:$0xff] %vm666_vm2, %v652_v62  ;;  %v559_v43 = vsel %vm1305_vm6, %v556_v11, %v553_v1  ;;  %v560_v12 = vadd.f32 1.0, %v975_v6  ;;  %v500_v29 = vmul.f32 1.442695, %v471_v21  ;;  %v470_v18 = vsub.f32 0.0, %v454_v28 }
 0x1ee   :  { %v977_v8 = vpop.eup %976  ;;  %v655_v41 = vadd.f32 %v559_v43, %v431_v20  ;;  %v550_v10 = vsel %vm549_vm7, %v547_v5, %v544_v3  ;;  %v473_v23 = vsub.f32 0.0, %v457_v50  ;;  %v566_v42 = vand.u32 2147483647, %v975_v6 }
 0x1ef   :  { %v979_v15 = vpop.eup %978  ;;  %v654_v16 = vadd.f32 %v550_v10, %v430_v32  ;;  %v571_v17 = vmul.f32 0.6931472, %v977_v8  ;;  %986 = vlog2.f32 %v560_v12  ;;  %v563_v32 = vmul.f32 -0.5, %v975_v6 }
 0x1f0   :  { %v981_v24 = vpop.eup %980  ;;  %672 = vst.msk [vmem:[#allocation2 + $0x28] sm:$0xff] %vm666_vm2, %v655_v41  ;;  %v587_v25 = vadd.f32 1.0, %v979_v15  ;;  %v590_v30 = vmul.f32 -0.5, %v979_v15  ;;  %v498_v60 = vmul.f32 1.442695, %v470_v18  ;;  %v432_v33 = vmax.f32 %v1247_v63, 0.0 }
 0x1f1   :  { %671 = vst.msk [vmem:[#allocation2 + $0x20] sm:$0xff] %vm666_vm2, %v654_v16  ;;  %v577_v20 = vsel %vm1351_vm8, %v574_v57, %v571_v17  ;;  %v578_v4 = vadd.f32 1.0, %v981_v24  ;;  %v564_v37 = vadd.f32 1.0, %v563_v32  ;;  %v581_v38 = vmul.f32 -0.5, %v981_v24 }
 0x1f2   :  { %v657_v53 = vadd.f32 %v577_v20, %v433_v44  ;;  %988 = vlog2.f32 %v587_v25  ;;  %v983_v27 = vpop.eup %982  ;;  %v504_v44 = vmul.f32 1.442695, %v473_v23  ;;  %v593_v45 = vand.u32 2147483647, %v979_v15 }
 0x1f3   :  { %990 = vlog2.f32 %v578_v4  ;;  %v605_v39 = vadd.f32 1.0, %v983_v27  ;;  %v456_v47 = vand.u32 2147483647, %v1371_v36  ;;  %v435_v11 = vmax.f32 %v1252_v9, 0.0 }
 0x1f4   :  { %674 = vst.msk [vmem:[#allocation2 + $0x38] sm:$0xff] %vm666_vm2, %v657_v53  ;;  %992 = vpow2.f32 %v500_v29  ;;  %v591_v52 = vadd.f32 1.0, %v590_v30  ;;  %v565_v0 = vmul.f32 %v975_v6, %v564_v37  ;;  %v582_v35 = vadd.f32 1.0, %v581_v38 }
 0x1f5   :  { %994 = vlog2.f32 %v605_v39  ;;  %v584_v13 = vand.u32 2147483647, %v981_v24  ;;  %v608_v56 = vmul.f32 -0.5, %v983_v27  ;;  %v472_v58 = vsub.f32 0.0, %v456_v47 }
 0x1f6   :  { %v985_v48 = vpop.eup %984  ;;  %996 = vpow2.f32 %v498_v60  ;;  %vm567_vm9 = vcmp.lt.f32.partialorder %v566_v42, 0.0004427343  ;;  %vm1376_vm10 = vcmp.lt.f32.partialorder %v593_v45, 0.0004427343  ;;  %v434_v63 = vmax.f32 %v1263_v26, 0.0 }
 0x1f7   :  { %v596_v55 = vadd.f32 1.0, %v985_v48  ;;  %998 = vpow2.f32 %v504_v44  ;;  %v592_v62 = vmul.f32 %v979_v15, %v591_v52  ;;  %v502_v1 = vmul.f32 1.442695, %v472_v58 }
 0x1f8   :  { %v583_v5 = vmul.f32 %v981_v24, %v582_v35  ;;  %vm585_vm11 = vcmp.lt.f32.partialorder %v584_v13, 0.0004427343  ;;  %v609_v43 = vadd.f32 1.0, %v608_v56  ;;  %v599_v19 = vmul.f32 -0.5, %v985_v48 }
 0x1f9   :  { %v987_v31 = vpop.eup %986  ;;  %1000 = vlog2.f32 %v596_v55  ;;  %v611_v41 = vand.u32 2147483647, %v983_v27  ;;  %v437_v24 = vmax.f32 %v1294_v7, 0.0  ;;  %v602_v25 = vand.u32 2147483647, %v985_v48 }
 0x1fa   :  { %v562_v22 = vmul.f32 0.6931472, %v987_v31  ;;  %1002 = vpow2.f32 %v502_v1  ;;  %v610_v17 = vmul.f32 %v983_v27, %v609_v43  ;;  %v600_v21 = vadd.f32 1.0, %v599_v19 }
 0x1fb   :  { %vm612_vm12 = vcmp.lt.f32.partialorder %v611_v41, 0.0004427343  ;;  %v436_v27 = vmax.f32 %v1319_v49, 0.0  ;;  %vm603_vm13 = vcmp.lt.f32.partialorder %v602_v25, 0.0004427343  ;;  %v439_v49 = vmax.f32 %v1324_v54, 0.0 }
 0x1fc   :  { %v989_v46 = vpop.eup %988  ;;  %v568_v34 = vsel %vm567_vm9, %v565_v0, %v562_v22  ;;  %v601_v18 = vmul.f32 %v985_v48, %v600_v21  ;;  %v438_v58 = vmax.f32 %v1342_v40, 0.0 }
 0x1fd   :  { %v991_v9 = vpop.eup %990  ;;  %v589_v61 = vmul.f32 0.6931472, %v989_v46  ;;  %v656_v2 = vadd.f32 %v568_v34, %v432_v33 }
 0x1fe   :  { %v580_v3 = vmul.f32 0.6931472, %v991_v9  ;;  %v993_v51 = vpop.eup %992 }
 0x1ff   :  { %v595_v6 = vsel %vm1376_vm10, %v592_v62, %v589_v61  ;;  %673 = vst.msk [vmem:[#allocation2 + $0x30] sm:$0xff] %vm666_vm2, %v656_v2  ;;  %v623_v57 = vadd.f32 1.0, %v993_v51  ;;  %v995_v12 = vpop.eup %994  ;;  %v626_v32 = vmul.f32 -0.5, %v993_v51  ;;  %v629_v44 = vand.u32 2147483647, %v993_v51 }
 0x200   :  { %v659_v26 = vadd.f32 %v595_v6, %v435_v11  ;;  %v586_v8 = vsel %vm585_vm11, %v583_v5, %v580_v3  ;;  %v997_v15 = vpop.eup %996  ;;  %v607_v16 = vmul.f32 0.6931472, %v995_v12  ;;  %v441_v62 = vmax.f32 %v1346_v14, 0.0 }
 0x201   :  { %v658_v10 = vadd.f32 %v586_v8, %v434_v63  ;;  %1004 = vlog2.f32 %v623_v57  ;;  %v614_v28 = vadd.f32 1.0, %v997_v15  ;;  %v999_v50 = vpop.eup %998  ;;  %v617_v7 = vmul.f32 -0.5, %v997_v15 }
 0x202   :  { %676 = vst.msk [vmem:[#allocation2 + $0x48] sm:$0xff] %vm666_vm2, %v659_v26  ;;  %v613_v20 = vsel %vm612_vm12, %v610_v17, %v607_v16  ;;  %v641_v23 = vadd.f32 1.0, %v999_v50  ;;  %v627_v39 = vadd.f32 1.0, %v626_v32  ;;  %v644_v42 = vmul.f32 -0.5, %v999_v50 }
 0x203   :  { %675 = vst.msk [vmem:[#allocation2 + $0x40] sm:$0xff] %vm666_vm2, %v658_v10  ;;  %v1001_v4 = vpop.eup %1000  ;;  %v661_v53 = vadd.f32 %v613_v20, %v437_v24  ;;  %1006 = vlog2.f32 %v614_v28  ;;  %v618_v47 = vadd.f32 1.0, %v617_v7  ;;  %v620_v11 = vand.u32 2147483647, %v997_v15 }
 0x204   :  { %v598_v29 = vmul.f32 0.6931472, %v1001_v4  ;;  %v1003_v30 = vpop.eup %1002  ;;  %1008 = vlog2.f32 %v641_v23  ;;  %v628_v33 = vmul.f32 %v993_v51, %v627_v39  ;;  %vm630_vm14 = vcmp.lt.f32.partialorder %v629_v44, 0.0004427343 }
 0x205   :  { %678 = vst.msk [vmem:[#allocation2 + $0x58] sm:$0xff] %vm666_vm2, %v661_v53  ;;  %v632_v60 = vadd.f32 1.0, %v1003_v30  ;;  %v635_v52 = vmul.f32 -0.5, %v1003_v30  ;;  %v645_v35 = vadd.f32 1.0, %v644_v42  ;;  %v619_v22 = vmul.f32 %v997_v15, %v618_v47 }
 0x206   :  { %v604_v37 = vsel %vm603_vm13, %v601_v18, %v598_v29  ;;  %v647_v56 = vand.u32 2147483647, %v999_v50  ;;  %vm621_vm15 = vcmp.lt.f32.partialorder %v620_v11, 0.0004427343  ;;  %v638_v61 = vand.u32 2147483647, %v1003_v30 }
 0x207   :  { %v660_v38 = vadd.f32 %v604_v37, %v436_v27  ;;  %1010 = vlog2.f32 %v632_v60  ;;  %v636_v63 = vadd.f32 1.0, %v635_v52  ;;  %v646_v54 = vmul.f32 %v999_v50, %v645_v35 }
 0x208   :  { %vm648_vm0 = vcmp.lt.f32.partialorder %v647_v56, 0.0004427343  ;;  %v440_v6 = vmax.f32 %v1371_v36, 0.0  ;;  %vm639_vm1 = vcmp.lt.f32.partialorder %v638_v61, 0.0004427343 }
 0x209   :  { %677 = vst.msk [vmem:[#allocation2 + $0x50] sm:$0xff] %vm666_vm2, %v660_v38  ;;  %v637_v40 = vmul.f32 %v1003_v30, %v636_v63 }
 0x20b   :  { %v1005_v45 = vpop.eup %1004 }
 0x20c   :  { %v625_v48 = vmul.f32 0.6931472, %v1005_v45 }
 0x20d   :  { %v1007_v31 = vpop.eup %1006 }
 0x20e   :  { %v631_v0 = vsel %vm630_vm14, %v628_v33, %v625_v48  ;;  %v616_v55 = vmul.f32 0.6931472, %v1007_v31  ;;  %v1009_v46 = vpop.eup %1008 }
 0x20f   :  { %v663_v13 = vadd.f32 %v631_v0, %v439_v49  ;;  %v643_v34 = vmul.f32 0.6931472, %v1009_v46 }
 0x210   :  { %v622_v59 = vsel %vm621_vm15, %v619_v22, %v616_v55 }
 0x211   :  { %680 = vst.msk [vmem:[#allocation2 + $0x68] sm:$0xff] %vm666_vm2, %v663_v13  ;;  %v662_v9 = vadd.f32 %v622_v59, %v438_v58  ;;  %v1011_v1 = vpop.eup %1010  ;;  %v649_v2 = vsel %vm648_vm0, %v646_v54, %v643_v34 }
 0x212   :  { %v665_v3 = vadd.f32 %v649_v2, %v441_v62  ;;  %v634_v5 = vmul.f32 0.6931472, %v1011_v1 }
 0x213   :  { %679 = vst.msk [vmem:[#allocation2 + $0x60] sm:$0xff] %vm666_vm2, %v662_v9 }
 0x214   :  { %682 = vst.msk [vmem:[#allocation2 + $0x78] sm:$0xff] %vm666_vm2, %v665_v3  ;;  %v640_v43 = vsel %vm639_vm1, %v637_v40, %v634_v5 }
 0x215   :  { %v664_v19 = vadd.f32 %v640_v43, %v440_v6 }
 0x217   :  { %681 = vst.msk [vmem:[#allocation2 + $0x70] sm:$0xff] %vm666_vm2, %v664_v19 }
 0x218   :  { %687 = vsyncadd [#allocation3], 1920  ;;  %s1036_s4 = smov [#allocation2]  }
 0x219   :  { %s688_s13 = sshll.u32 %s1036_s4, 4  ;;  %s689_s13 = int_to_ptr.vmem [resolvable:$true] %s688_s13 }
 0x21a   :  { %s1012_s14 = scalar_lea.vmem %s689_s13, 128  ;;  %s1016_s15 = scalar_lea.vmem %s689_s13, 2048 }
 0x21b   :  { %p1013_p0 = scmp.ne.s32.totalorder %s689_s13, %s1012_s14  ;;  %p1017_p1 = scmp.lt.s32.totalorder %s689_s13, %s689_s13 }
 0x21c   :  { %p1018_p2 = scmp.lt.s32.totalorder %s1016_s15, %s1012_s14 }
 0x21e   :  { %p1019_p3 = por %p1018_p2, %p1017_p1 }
 0x220   :  { %p1020_p4 = pnand %p1019_p3, %p1013_p0 }
 0x222   :  { %1023 = shalt.err (!%p1020_p4)
}
 0x223   :  { %s1024_s18 = scalar_lea.hbm %s1415_s5, 128 }
 0x224   :  { %p1025_p5 = scmp.ne.s32.totalorder %s1415_s5, %s1024_s18  ;;  %p1028_p6 = scmp.lt.u32.totalorder %s1024_s18, %s1415_s5 }
 0x226   :  { %p1030_p7 = pnand %p1028_p6, %p1025_p5 }
 0x228   :  { %1033 = shalt.err (!%p1030_p7)
}
 0x229   :  { %s1037_s23 = smov 128   ;;  %s1038_s24 = smov 8  }
 0x22a   :  { %694 = dma.vmem_to_hbm [thread:$0]  %s689_s13, 128, %s1415_s5, [#allocation3], %s1037_s23, %s1037_s23, %s1038_s24  }
 0x22b   :  { %1034 = dma.done.wait [#allocation3], 2048  }
 0x22c   :  { %1035 = vsyncadd [#allocation3], 4294965248 }
 0x22d   :  { %698 = vsyncpa [#allocation3], 1 }

</bundles_post_ra>
